<compile_context>
chip_gen: v7x
topology: tpu7x:2x2x1
jax: 0.10.0
libtpu: 0.0.40
codegen_flags: <defaults>
</compile_context>

<pallas_src>
import functools

import jax
import jax.numpy as jnp
from jax.experimental import pallas as pl
from jax.experimental.pallas import tpu as pltpu


def _lstm_mlp_kernel(x_ref, wih_ref, whh_ref, b_ref, ext_ref,
                     w1h_ref, w1e_ref, b1_ref, w2_ref, b2_ref,
                     out_ref, hseq_ref, *, num_layers, seq_len, hidden):
    H, T, L = hidden, seq_len, num_layers

    layer_in = x_ref[...].astype(jnp.float32)                 # (T, H) lane-padded layer-0 input
    finals = []
    for l in range(L):
        wih_t = wih_ref[l]                                    # (H, 4H)
        whh_t = whh_ref[l]                                    # (H, 4H)
        b = b_ref[l:l + 1, :]                                 # (1, 4H)  (b_ih + b_hh)

        # Hoisted batched input projection for all T steps (off the serial chain),
        # with the bias folded in:  (T,H) @ (H,4H) + b  ->  (T,4H).
        pre = jnp.dot(layer_in, wih_t, preferred_element_type=jnp.float32) + b

        h = jnp.zeros((1, H), jnp.float32)
        c = jnp.zeros((1, H), jnp.float32)
        for t in range(T):
            # Serial chain per step: one 1-row recurrent matmul + gate math.
            z = pre[t:t + 1, :] + jnp.dot(h, whh_t, preferred_element_type=jnp.float32)
            sig = jax.nn.sigmoid(z)                           # whole-vreg EUP op
            tnh = jnp.tanh(z)                                 # whole-vreg EUP op
            i = sig[:, 0:H]
            f = sig[:, H:2 * H]
            g = tnh[:, 2 * H:3 * H]
            o = sig[:, 3 * H:4 * H]
            c = f * c + i * g
            h = o * jnp.tanh(c)
            if l + 1 < L:
                hseq_ref[t:t + 1, :] = h                      # row t of next layer's input
        finals.append(h)
        if l + 1 < L:
            layer_in = hseq_ref[...]                          # (T, H) input for layer l+1

    # Head: combined = [ht.view(1,-1), ext]; Linear(L*H+F -> 4) -> ReLU -> Linear(4 -> 1).
    # The concat is avoided by splitting the first matmul over the concat segments.
    z1 = b1_ref[...]                                          # (1, 4)
    for l in range(L):
        z1 = z1 + jnp.dot(finals[l], w1h_ref[l * H:(l + 1) * H, :],
                          preferred_element_type=jnp.float32)
    z1 = z1 + jnp.dot(ext_ref[...], w1e_ref[...], preferred_element_type=jnp.float32)
    a1 = jnp.maximum(z1, 0.0)
    out_ref[...] = (jnp.dot(a1, w2_ref[...], preferred_element_type=jnp.float32)
                    + b2_ref[...])


@functools.partial(jax.jit, static_argnames=("hidden_size", "num_layers"))
def lstm_model_forward(x, ext_data, lengths, params, hidden_size, num_layers):
    del lengths  # dead code in the PyTorch forward (packed tensor never consumed)
    B, T, I = x.shape
    H, L = hidden_size, num_layers
    F = ext_data.shape[1]
    assert B == 1, "PyTorch forward (ht.view(1,-1) + Linear) only works for batch=1"
    assert I <= H, "lane-padding of the LSTM input assumes lstm_input_size <= hidden_size"

    # Pad LSTM input features to H lanes; pad layer-0 W_ih rows accordingly with zeros.
    x_pad = jnp.zeros((T, H), jnp.float32).at[:, :I].set(x[0].astype(jnp.float32))

    wih_t, whh_t, bias = [], [], []
    for l in range(L):
        w_ih = params[f"weight_ih_l{l}"]                      # (4H, in_l)
        w_hh = params[f"weight_hh_l{l}"]                      # (4H, H)
        b = params[f"bias_ih_l{l}"] + params[f"bias_hh_l{l}"]
        w_ih_tp = jnp.zeros((H, 4 * H), jnp.float32).at[:w_ih.shape[1], :].set(w_ih.T)
        wih_t.append(w_ih_tp)
        whh_t.append(w_hh.T)
        bias.append(b)
    wih_t = jnp.stack(wih_t)                                  # (L, H, 4H)
    whh_t = jnp.stack(whh_t)                                  # (L, H, 4H)
    bias = jnp.stack(bias)                                    # (L, 4H)

    W1, b1 = params["linear_w"], params["linear_b"]           # (4, L*H+F), (4,)
    W2, b2 = params["final_w"], params["final_b"]             # (1, 4), (1,)
    w1h = W1[:, :L * H].T                                     # (L*H, 4)
    w1e = W1[:, L * H:].T                                     # (F, 4)
    b1 = b1.reshape(1, 4)
    w2 = W2.T                                                 # (4, 1)
    b2 = b2.reshape(1, 1)
    ext = ext_data.astype(jnp.float32)                        # (1, F)

    def fs(shape):
        nd = len(shape)
        return pl.BlockSpec(shape, lambda i, nd=nd: (0,) * nd)

    kernel = functools.partial(_lstm_mlp_kernel, num_layers=L, seq_len=T, hidden=H)
    out = pl.pallas_call(
        kernel,
        grid=(1,),
        in_specs=[fs(x_pad.shape), fs(wih_t.shape), fs(whh_t.shape), fs(bias.shape),
                  fs(ext.shape), fs(w1h.shape), fs(w1e.shape), fs(b1.shape),
                  fs(w2.shape), fs(b2.shape)],
        out_specs=fs((1, 1)),
        out_shape=jax.ShapeDtypeStruct((1, 1), jnp.float32),
        scratch_shapes=[pltpu.VMEM((T, H), jnp.float32)],     # per-layer hidden-state sequence
        compiler_params=pltpu.CompilerParams(dimension_semantics=("arbitrary",)),
    )(x_pad, wih_t, whh_t, bias, ext, w1h, w1e, b1, w2, b2)
    return out[0, 0]


def reference_forward(x, ext_data, params, hidden_size, num_layers):
    """Pure-JAX reference replicating nn.LSTM + Linear/ReLU/Linear semantics."""
    _, T, _ = x.shape
    H, L = hidden_size, num_layers
    inp = x[0]
    hs = []
    for l in range(L):
        w_ih = params[f"weight_ih_l{l}"]
        w_hh = params[f"weight_hh_l{l}"]
        b_ih = params[f"bias_ih_l{l}"]
        b_hh = params[f"bias_hh_l{l}"]
        h = jnp.zeros((H,), jnp.float32)
        c = jnp.zeros((H,), jnp.float32)
        outs = []
        for t in range(T):
            z = w_ih @ inp[t] + b_ih + w_hh @ h + b_hh
            i = jax.nn.sigmoid(z[0:H])
            f = jax.nn.sigmoid(z[H:2 * H])
            g = jnp.tanh(z[2 * H:3 * H])
            o = jax.nn.sigmoid(z[3 * H:4 * H])
            c = f * c + i * g
            h = o * jnp.tanh(c)
            outs.append(h)
        inp = jnp.stack(outs)
        hs.append(h)
    ht_flat = jnp.concatenate(hs)[None, :]
    combined = jnp.concatenate([ht_flat, ext_data.astype(jnp.float32)], axis=1)
    z1 = combined @ params["linear_w"].T + params["linear_b"]
    a1 = jnp.maximum(z1, 0.0)
    pred = a1 @ params["final_w"].T + params["final_b"]
    return pred.squeeze()


def init_params(key, feature_size, hidden_size, num_layers, lstm_input_size=4):
    H, L, F = hidden_size, num_layers, feature_size
    params = {}
    k = 1.0 / jnp.sqrt(H)
    keys = jax.random.split(key, 4 * L + 4)
    ki = 0
    for l in range(L):
        in_l = lstm_input_size if l == 0 else H
        params[f"weight_ih_l{l}"] = jax.random.uniform(keys[ki], (4 * H, in_l), jnp.float32, -k, k); ki += 1
        params[f"weight_hh_l{l}"] = jax.random.uniform(keys[ki], (4 * H, H), jnp.float32, -k, k); ki += 1
        params[f"bias_ih_l{l}"] = jax.random.uniform(keys[ki], (4 * H,), jnp.float32, -k, k); ki += 1
        params[f"bias_hh_l{l}"] = jax.random.uniform(keys[ki], (4 * H,), jnp.float32, -k, k); ki += 1
    d_in = L * H + F
    k1 = 1.0 / jnp.sqrt(d_in)
    params["linear_w"] = jax.random.uniform(keys[ki], (4, d_in), jnp.float32, -k1, k1); ki += 1
    params["linear_b"] = jax.random.uniform(keys[ki], (4,), jnp.float32, -k1, k1); ki += 1
    k2 = 1.0 / jnp.sqrt(4.0)
    params["final_w"] = jax.random.uniform(keys[ki], (1, 4), jnp.float32, -k2, k2); ki += 1
    params["final_b"] = jax.random.uniform(keys[ki], (1,), jnp.float32, -k2, k2); ki += 1
    return params


if __name__ == "__main__":
    feature_size = 4
    hidden_size = 32
    num_layers = 2
    T = 8

    root = jax.random.PRNGKey(0)
    kp, kx, ke = jax.random.split(root, 3)
    params = init_params(kp, feature_size, hidden_size, num_layers)

    x = jax.random.normal(kx, (1, T, 4), jnp.float32)          # batch_first LSTM input
    ext_data = jax.random.normal(ke, (1, feature_size), jnp.float32)
    lengths = jnp.array([T], jnp.int32)                        # unused by the compute path

    out = lstm_model_forward(x, ext_data, lengths, params, hidden_size, num_layers)
    out = jax.block_until_ready(out)

    ref = reference_forward(x, ext_data, params, hidden_size, num_layers)
    assert jnp.allclose(out, ref, atol=1e-5, rtol=1e-5), (out, ref)
    print("KERNEL_OK")
</pallas_src>

<mosaic_0001>
module attributes {stable_mosaic.version = 11 : i64} {
  func.func @_lstm_mlp_kernel(%arg0: i32, %arg1: memref<8x32xf32, #tpu.memory_space<vmem>>, %arg2: memref<2x32x128xf32, #tpu.memory_space<vmem>>, %arg3: memref<2x32x128xf32, #tpu.memory_space<vmem>>, %arg4: memref<2x128xf32, #tpu.memory_space<vmem>>, %arg5: memref<1x4xf32, #tpu.memory_space<vmem>>, %arg6: memref<64x4xf32, #tpu.memory_space<vmem>>, %arg7: memref<4x4xf32, #tpu.memory_space<vmem>>, %arg8: memref<1x4xf32, #tpu.memory_space<vmem>>, %arg9: memref<4x1xf32, #tpu.memory_space<vmem>>, %arg10: memref<1x1xf32, #tpu.memory_space<vmem>>, %arg11: memref<1x1xf32, #tpu.memory_space<vmem>>, %arg12: memref<8x32xf32, #tpu.memory_space<vmem>>) attributes {dimension_semantics = [#tpu.dimension_semantics<arbitrary>], iteration_bounds = array<i64: 1>, scalar_prefetch = 0 : i64, scratch_operands = 1 : i64, tpu.core_type = #tpu.core_type<tc>, window_params = [{pipeline_mode = #tpu.pipeline_mode<synchronous>, transform_indices = @transform_0, window_bounds = array<i64: 8, 32>}, {pipeline_mode = #tpu.pipeline_mode<synchronous>, transform_indices = @transform_1, window_bounds = array<i64: 2, 32, 128>}, {pipeline_mode = #tpu.pipeline_mode<synchronous>, transform_indices = @transform_2, window_bounds = array<i64: 2, 32, 128>}, {pipeline_mode = #tpu.pipeline_mode<synchronous>, transform_indices = @transform_3, window_bounds = array<i64: 2, 128>}, {pipeline_mode = #tpu.pipeline_mode<synchronous>, transform_indices = @transform_4, window_bounds = array<i64: 1, 4>}, {pipeline_mode = #tpu.pipeline_mode<synchronous>, transform_indices = @transform_5, window_bounds = array<i64: 64, 4>}, {pipeline_mode = #tpu.pipeline_mode<synchronous>, transform_indices = @transform_6, window_bounds = array<i64: 4, 4>}, {pipeline_mode = #tpu.pipeline_mode<synchronous>, transform_indices = @transform_7, window_bounds = array<i64: 1, 4>}, {pipeline_mode = #tpu.pipeline_mode<synchronous>, transform_indices = @transform_8, window_bounds = array<i64: 4, 1>}, {pipeline_mode = #tpu.pipeline_mode<synchronous>, transform_indices = @transform_9, window_bounds = array<i64: 1, 1>}, {pipeline_mode = #tpu.pipeline_mode<synchronous>, transform_indices = @transform_10, window_bounds = array<i64: 1, 1>}]} {
    %c0 = arith.constant 0 : index
    %c0_0 = arith.constant 0 : index
    %0 = vector.load %arg1[%c0, %c0_0] : memref<8x32xf32, #tpu.memory_space<vmem>>, vector<8x32xf32>
    %c0_1 = arith.constant 0 : index
    %c0_2 = arith.constant 0 : index
    %c0_3 = arith.constant 0 : index
    %1 = vector.load %arg2[%c0_1, %c0_2, %c0_3] : memref<2x32x128xf32, #tpu.memory_space<vmem>>, vector<1x32x128xf32>
    %2 = vector.shape_cast %1 : vector<1x32x128xf32> to vector<32x128xf32>
    %c0_4 = arith.constant 0 : index
    %c0_5 = arith.constant 0 : index
    %c0_6 = arith.constant 0 : index
    %3 = vector.load %arg3[%c0_4, %c0_5, %c0_6] : memref<2x32x128xf32, #tpu.memory_space<vmem>>, vector<1x32x128xf32>
    %4 = vector.shape_cast %3 : vector<1x32x128xf32> to vector<32x128xf32>
    %c0_7 = arith.constant 0 : index
    %c0_8 = arith.constant 0 : index
    %5 = vector.load %arg4[%c0_7, %c0_8] : memref<2x128xf32, #tpu.memory_space<vmem>>, vector<1x128xf32>
    %cst = arith.constant dense<0.000000e+00> : vector<8x128xf32>
    %6 = tpu.matmul %0, %2, %cst {dimension_numbers = #tpu.dot_dimension_numbers<[1], [0], [0], [1], [0, 0, 1, 1], [], []>} : vector<8x32xf32>, vector<32x128xf32>, vector<8x128xf32> -> vector<8x128xf32>
    %7 = vector.broadcast %5 : vector<1x128xf32> to vector<8x128xf32>
    %8 = arith.addf %6, %7 : vector<8x128xf32>
    %cst_9 = arith.constant 0.000000e+00 : f32
    %9 = vector.broadcast %cst_9 : f32 to vector<1x32xf32>
    %cst_10 = arith.constant 0.000000e+00 : f32
    %10 = vector.broadcast %cst_10 : f32 to vector<1x32xf32>
    %11 = vector.extract_strided_slice %8 {offsets = [0, 0], sizes = [1, 128], strides = [1, 1]} : vector<8x128xf32> to vector<1x128xf32>
    %cst_11 = arith.constant dense<0.000000e+00> : vector<1x128xf32>
    %12 = tpu.matmul %9, %4, %cst_11 {dimension_numbers = #tpu.dot_dimension_numbers<[1], [0], [0], [1], [0, 0, 1, 1], [], []>} : vector<1x32xf32>, vector<32x128xf32>, vector<1x128xf32> -> vector<1x128xf32>
    %13 = arith.addf %11, %12 : vector<1x128xf32>
    %14 = arith.negf %13 : vector<1x128xf32>
    %15 = math.exp %14 : vector<1x128xf32>
    %cst_12 = arith.constant 1.000000e+00 : f32
    %16 = vector.broadcast %cst_12 : f32 to vector<1x128xf32>
    %17 = arith.addf %16, %15 : vector<1x128xf32>
    %18 = arith.divf %16, %17 : vector<1x128xf32>
    %19 = math.tanh %13 : vector<1x128xf32>
    %20 = vector.extract_strided_slice %18 {offsets = [0, 0], sizes = [1, 32], strides = [1, 1]} : vector<1x128xf32> to vector<1x32xf32>
    %21 = vector.extract_strided_slice %18 {offsets = [0, 32], sizes = [1, 32], strides = [1, 1]} : vector<1x128xf32> to vector<1x32xf32>
    %22 = vector.extract_strided_slice %19 {offsets = [0, 64], sizes = [1, 32], strides = [1, 1]} : vector<1x128xf32> to vector<1x32xf32>
    %23 = vector.extract_strided_slice %18 {offsets = [0, 96], sizes = [1, 32], strides = [1, 1]} : vector<1x128xf32> to vector<1x32xf32>
    %24 = arith.mulf %21, %10 : vector<1x32xf32>
    %25 = arith.mulf %20, %22 : vector<1x32xf32>
    %26 = arith.addf %24, %25 : vector<1x32xf32>
    %27 = math.tanh %26 : vector<1x32xf32>
    %28 = arith.mulf %23, %27 : vector<1x32xf32>
    %c0_13 = arith.constant 0 : index
    %c0_14 = arith.constant 0 : index
    %29 = vector.load %arg12[%c0_13, %c0_14] : memref<8x32xf32, #tpu.memory_space<vmem>>, vector<1x32xf32>
    tpu.vector_store %arg12[%c0_13, %c0_14], %28 {strides = array<i32>} : memref<8x32xf32, #tpu.memory_space<vmem>>, vector<1x32xf32>,
    %30 = vector.extract_strided_slice %8 {offsets = [1, 0], sizes = [1, 128], strides = [1, 1]} : vector<8x128xf32> to vector<1x128xf32>
    %cst_15 = arith.constant dense<0.000000e+00> : vector<1x128xf32>
    %31 = tpu.matmul %28, %4, %cst_15 {dimension_numbers = #tpu.dot_dimension_numbers<[1], [0], [0], [1], [0, 0, 1, 1], [], []>} : vector<1x32xf32>, vector<32x128xf32>, vector<1x128xf32> -> vector<1x128xf32>
    %32 = arith.addf %30, %31 : vector<1x128xf32>
    %33 = arith.negf %32 : vector<1x128xf32>
    %34 = math.exp %33 : vector<1x128xf32>
    %cst_16 = arith.constant 1.000000e+00 : f32
    %35 = vector.broadcast %cst_16 : f32 to vector<1x128xf32>
    %36 = arith.addf %35, %34 : vector<1x128xf32>
    %37 = arith.divf %35, %36 : vector<1x128xf32>
    %38 = math.tanh %32 : vector<1x128xf32>
    %39 = vector.extract_strided_slice %37 {offsets = [0, 0], sizes = [1, 32], strides = [1, 1]} : vector<1x128xf32> to vector<1x32xf32>
    %40 = vector.extract_strided_slice %37 {offsets = [0, 32], sizes = [1, 32], strides = [1, 1]} : vector<1x128xf32> to vector<1x32xf32>
    %41 = vector.extract_strided_slice %38 {offsets = [0, 64], sizes = [1, 32], strides = [1, 1]} : vector<1x128xf32> to vector<1x32xf32>
    %42 = vector.extract_strided_slice %37 {offsets = [0, 96], sizes = [1, 32], strides = [1, 1]} : vector<1x128xf32> to vector<1x32xf32>
    %43 = arith.mulf %40, %26 : vector<1x32xf32>
    %44 = arith.mulf %39, %41 : vector<1x32xf32>
    %45 = arith.addf %43, %44 : vector<1x32xf32>
    %46 = math.tanh %45 : vector<1x32xf32>
    %47 = arith.mulf %42, %46 : vector<1x32xf32>
    %c1 = arith.constant 1 : index
    %c0_17 = arith.constant 0 : index
    %48 = vector.load %arg12[%c1, %c0_17] : memref<8x32xf32, #tpu.memory_space<vmem>>, vector<1x32xf32>
    tpu.vector_store %arg12[%c1, %c0_17], %47 {strides = array<i32>} : memref<8x32xf32, #tpu.memory_space<vmem>>, vector<1x32xf32>,
    %49 = vector.extract_strided_slice %8 {offsets = [2, 0], sizes = [1, 128], strides = [1, 1]} : vector<8x128xf32> to vector<1x128xf32>
    %cst_18 = arith.constant dense<0.000000e+00> : vector<1x128xf32>
    %50 = tpu.matmul %47, %4, %cst_18 {dimension_numbers = #tpu.dot_dimension_numbers<[1], [0], [0], [1], [0, 0, 1, 1], [], []>} : vector<1x32xf32>, vector<32x128xf32>, vector<1x128xf32> -> vector<1x128xf32>
    %51 = arith.addf %49, %50 : vector<1x128xf32>
    %52 = arith.negf %51 : vector<1x128xf32>
    %53 = math.exp %52 : vector<1x128xf32>
    %cst_19 = arith.constant 1.000000e+00 : f32
    %54 = vector.broadcast %cst_19 : f32 to vector<1x128xf32>
    %55 = arith.addf %54, %53 : vector<1x128xf32>
    %56 = arith.divf %54, %55 : vector<1x128xf32>
    %57 = math.tanh %51 : vector<1x128xf32>
    %58 = vector.extract_strided_slice %56 {offsets = [0, 0], sizes = [1, 32], strides = [1, 1]} : vector<1x128xf32> to vector<1x32xf32>
    %59 = vector.extract_strided_slice %56 {offsets = [0, 32], sizes = [1, 32], strides = [1, 1]} : vector<1x128xf32> to vector<1x32xf32>
    %60 = vector.extract_strided_slice %57 {offsets = [0, 64], sizes = [1, 32], strides = [1, 1]} : vector<1x128xf32> to vector<1x32xf32>
    %61 = vector.extract_strided_slice %56 {offsets = [0, 96], sizes = [1, 32], strides = [1, 1]} : vector<1x128xf32> to vector<1x32xf32>
    %62 = arith.mulf %59, %45 : vector<1x32xf32>
    %63 = arith.mulf %58, %60 : vector<1x32xf32>
    %64 = arith.addf %62, %63 : vector<1x32xf32>
    %65 = math.tanh %64 : vector<1x32xf32>
    %66 = arith.mulf %61, %65 : vector<1x32xf32>
    %c2 = arith.constant 2 : index
    %c0_20 = arith.constant 0 : index
    %67 = vector.load %arg12[%c2, %c0_20] : memref<8x32xf32, #tpu.memory_space<vmem>>, vector<1x32xf32>
    tpu.vector_store %arg12[%c2, %c0_20], %66 {strides = array<i32>} : memref<8x32xf32, #tpu.memory_space<vmem>>, vector<1x32xf32>,
    %68 = vector.extract_strided_slice %8 {offsets = [3, 0], sizes = [1, 128], strides = [1, 1]} : vector<8x128xf32> to vector<1x128xf32>
    %cst_21 = arith.constant dense<0.000000e+00> : vector<1x128xf32>
    %69 = tpu.matmul %66, %4, %cst_21 {dimension_numbers = #tpu.dot_dimension_numbers<[1], [0], [0], [1], [0, 0, 1, 1], [], []>} : vector<1x32xf32>, vector<32x128xf32>, vector<1x128xf32> -> vector<1x128xf32>
    %70 = arith.addf %68, %69 : vector<1x128xf32>
    %71 = arith.negf %70 : vector<1x128xf32>
    %72 = math.exp %71 : vector<1x128xf32>
    %cst_22 = arith.constant 1.000000e+00 : f32
    %73 = vector.broadcast %cst_22 : f32 to vector<1x128xf32>
    %74 = arith.addf %73, %72 : vector<1x128xf32>
    %75 = arith.divf %73, %74 : vector<1x128xf32>
    %76 = math.tanh %70 : vector<1x128xf32>
    %77 = vector.extract_strided_slice %75 {offsets = [0, 0], sizes = [1, 32], strides = [1, 1]} : vector<1x128xf32> to vector<1x32xf32>
    %78 = vector.extract_strided_slice %75 {offsets = [0, 32], sizes = [1, 32], strides = [1, 1]} : vector<1x128xf32> to vector<1x32xf32>
    %79 = vector.extract_strided_slice %76 {offsets = [0, 64], sizes = [1, 32], strides = [1, 1]} : vector<1x128xf32> to vector<1x32xf32>
    %80 = vector.extract_strided_slice %75 {offsets = [0, 96], sizes = [1, 32], strides = [1, 1]} : vector<1x128xf32> to vector<1x32xf32>
    %81 = arith.mulf %78, %64 : vector<1x32xf32>
    %82 = arith.mulf %77, %79 : vector<1x32xf32>
    %83 = arith.addf %81, %82 : vector<1x32xf32>
    %84 = math.tanh %83 : vector<1x32xf32>
    %85 = arith.mulf %80, %84 : vector<1x32xf32>
    %c3 = arith.constant 3 : index
    %c0_23 = arith.constant 0 : index
    %86 = vector.load %arg12[%c3, %c0_23] : memref<8x32xf32, #tpu.memory_space<vmem>>, vector<1x32xf32>
    tpu.vector_store %arg12[%c3, %c0_23], %85 {strides = array<i32>} : memref<8x32xf32, #tpu.memory_space<vmem>>, vector<1x32xf32>,
    %87 = vector.extract_strided_slice %8 {offsets = [4, 0], sizes = [1, 128], strides = [1, 1]} : vector<8x128xf32> to vector<1x128xf32>
    %cst_24 = arith.constant dense<0.000000e+00> : vector<1x128xf32>
    %88 = tpu.matmul %85, %4, %cst_24 {dimension_numbers = #tpu.dot_dimension_numbers<[1], [0], [0], [1], [0, 0, 1, 1], [], []>} : vector<1x32xf32>, vector<32x128xf32>, vector<1x128xf32> -> vector<1x128xf32>
    %89 = arith.addf %87, %88 : vector<1x128xf32>
    %90 = arith.negf %89 : vector<1x128xf32>
    %91 = math.exp %90 : vector<1x128xf32>
    %cst_25 = arith.constant 1.000000e+00 : f32
    %92 = vector.broadcast %cst_25 : f32 to vector<1x128xf32>
    %93 = arith.addf %92, %91 : vector<1x128xf32>
    %94 = arith.divf %92, %93 : vector<1x128xf32>
    %95 = math.tanh %89 : vector<1x128xf32>
    %96 = vector.extract_strided_slice %94 {offsets = [0, 0], sizes = [1, 32], strides = [1, 1]} : vector<1x128xf32> to vector<1x32xf32>
    %97 = vector.extract_strided_slice %94 {offsets = [0, 32], sizes = [1, 32], strides = [1, 1]} : vector<1x128xf32> to vector<1x32xf32>
    %98 = vector.extract_strided_slice %95 {offsets = [0, 64], sizes = [1, 32], strides = [1, 1]} : vector<1x128xf32> to vector<1x32xf32>
    %99 = vector.extract_strided_slice %94 {offsets = [0, 96], sizes = [1, 32], strides = [1, 1]} : vector<1x128xf32> to vector<1x32xf32>
    %100 = arith.mulf %97, %83 : vector<1x32xf32>
    %101 = arith.mulf %96, %98 : vector<1x32xf32>
    %102 = arith.addf %100, %101 : vector<1x32xf32>
    %103 = math.tanh %102 : vector<1x32xf32>
    %104 = arith.mulf %99, %103 : vector<1x32xf32>
    %c4 = arith.constant 4 : index
    %c0_26 = arith.constant 0 : index
    %105 = vector.load %arg12[%c4, %c0_26] : memref<8x32xf32, #tpu.memory_space<vmem>>, vector<1x32xf32>
    tpu.vector_store %arg12[%c4, %c0_26], %104 {strides = array<i32>} : memref<8x32xf32, #tpu.memory_space<vmem>>, vector<1x32xf32>,
    %106 = vector.extract_strided_slice %8 {offsets = [5, 0], sizes = [1, 128], strides = [1, 1]} : vector<8x128xf32> to vector<1x128xf32>
    %cst_27 = arith.constant dense<0.000000e+00> : vector<1x128xf32>
    %107 = tpu.matmul %104, %4, %cst_27 {dimension_numbers = #tpu.dot_dimension_numbers<[1], [0], [0], [1], [0, 0, 1, 1], [], []>} : vector<1x32xf32>, vector<32x128xf32>, vector<1x128xf32> -> vector<1x128xf32>
    %108 = arith.addf %106, %107 : vector<1x128xf32>
    %109 = arith.negf %108 : vector<1x128xf32>
    %110 = math.exp %109 : vector<1x128xf32>
    %cst_28 = arith.constant 1.000000e+00 : f32
    %111 = vector.broadcast %cst_28 : f32 to vector<1x128xf32>
    %112 = arith.addf %111, %110 : vector<1x128xf32>
    %113 = arith.divf %111, %112 : vector<1x128xf32>
    %114 = math.tanh %108 : vector<1x128xf32>
    %115 = vector.extract_strided_slice %113 {offsets = [0, 0], sizes = [1, 32], strides = [1, 1]} : vector<1x128xf32> to vector<1x32xf32>
    %116 = vector.extract_strided_slice %113 {offsets = [0, 32], sizes = [1, 32], strides = [1, 1]} : vector<1x128xf32> to vector<1x32xf32>
    %117 = vector.extract_strided_slice %114 {offsets = [0, 64], sizes = [1, 32], strides = [1, 1]} : vector<1x128xf32> to vector<1x32xf32>
    %118 = vector.extract_strided_slice %113 {offsets = [0, 96], sizes = [1, 32], strides = [1, 1]} : vector<1x128xf32> to vector<1x32xf32>
    %119 = arith.mulf %116, %102 : vector<1x32xf32>
    %120 = arith.mulf %115, %117 : vector<1x32xf32>
    %121 = arith.addf %119, %120 : vector<1x32xf32>
    %122 = math.tanh %121 : vector<1x32xf32>
    %123 = arith.mulf %118, %122 : vector<1x32xf32>
    %c5 = arith.constant 5 : index
    %c0_29 = arith.constant 0 : index
    %124 = vector.load %arg12[%c5, %c0_29] : memref<8x32xf32, #tpu.memory_space<vmem>>, vector<1x32xf32>
    tpu.vector_store %arg12[%c5, %c0_29], %123 {strides = array<i32>} : memref<8x32xf32, #tpu.memory_space<vmem>>, vector<1x32xf32>,
    %125 = vector.extract_strided_slice %8 {offsets = [6, 0], sizes = [1, 128], strides = [1, 1]} : vector<8x128xf32> to vector<1x128xf32>
    %cst_30 = arith.constant dense<0.000000e+00> : vector<1x128xf32>
    %126 = tpu.matmul %123, %4, %cst_30 {dimension_numbers = #tpu.dot_dimension_numbers<[1], [0], [0], [1], [0, 0, 1, 1], [], []>} : vector<1x32xf32>, vector<32x128xf32>, vector<1x128xf32> -> vector<1x128xf32>
    %127 = arith.addf %125, %126 : vector<1x128xf32>
    %128 = arith.negf %127 : vector<1x128xf32>
    %129 = math.exp %128 : vector<1x128xf32>
    %cst_31 = arith.constant 1.000000e+00 : f32
    %130 = vector.broadcast %cst_31 : f32 to vector<1x128xf32>
    %131 = arith.addf %130, %129 : vector<1x128xf32>
    %132 = arith.divf %130, %131 : vector<1x128xf32>
    %133 = math.tanh %127 : vector<1x128xf32>
    %134 = vector.extract_strided_slice %132 {offsets = [0, 0], sizes = [1, 32], strides = [1, 1]} : vector<1x128xf32> to vector<1x32xf32>
    %135 = vector.extract_strided_slice %132 {offsets = [0, 32], sizes = [1, 32], strides = [1, 1]} : vector<1x128xf32> to vector<1x32xf32>
    %136 = vector.extract_strided_slice %133 {offsets = [0, 64], sizes = [1, 32], strides = [1, 1]} : vector<1x128xf32> to vector<1x32xf32>
    %137 = vector.extract_strided_slice %132 {offsets = [0, 96], sizes = [1, 32], strides = [1, 1]} : vector<1x128xf32> to vector<1x32xf32>
    %138 = arith.mulf %135, %121 : vector<1x32xf32>
    %139 = arith.mulf %134, %136 : vector<1x32xf32>
    %140 = arith.addf %138, %139 : vector<1x32xf32>
    %141 = math.tanh %140 : vector<1x32xf32>
    %142 = arith.mulf %137, %141 : vector<1x32xf32>
    %c6 = arith.constant 6 : index
    %c0_32 = arith.constant 0 : index
    %143 = vector.load %arg12[%c6, %c0_32] : memref<8x32xf32, #tpu.memory_space<vmem>>, vector<1x32xf32>
    tpu.vector_store %arg12[%c6, %c0_32], %142 {strides = array<i32>} : memref<8x32xf32, #tpu.memory_space<vmem>>, vector<1x32xf32>,
    %144 = vector.extract_strided_slice %8 {offsets = [7, 0], sizes = [1, 128], strides = [1, 1]} : vector<8x128xf32> to vector<1x128xf32>
    %cst_33 = arith.constant dense<0.000000e+00> : vector<1x128xf32>
    %145 = tpu.matmul %142, %4, %cst_33 {dimension_numbers = #tpu.dot_dimension_numbers<[1], [0], [0], [1], [0, 0, 1, 1], [], []>} : vector<1x32xf32>, vector<32x128xf32>, vector<1x128xf32> -> vector<1x128xf32>
    %146 = arith.addf %144, %145 : vector<1x128xf32>
    %147 = arith.negf %146 : vector<1x128xf32>
    %148 = math.exp %147 : vector<1x128xf32>
    %cst_34 = arith.constant 1.000000e+00 : f32
    %149 = vector.broadcast %cst_34 : f32 to vector<1x128xf32>
    %150 = arith.addf %149, %148 : vector<1x128xf32>
    %151 = arith.divf %149, %150 : vector<1x128xf32>
    %152 = math.tanh %146 : vector<1x128xf32>
    %153 = vector.extract_strided_slice %151 {offsets = [0, 0], sizes = [1, 32], strides = [1, 1]} : vector<1x128xf32> to vector<1x32xf32>
    %154 = vector.extract_strided_slice %151 {offsets = [0, 32], sizes = [1, 32], strides = [1, 1]} : vector<1x128xf32> to vector<1x32xf32>
    %155 = vector.extract_strided_slice %152 {offsets = [0, 64], sizes = [1, 32], strides = [1, 1]} : vector<1x128xf32> to vector<1x32xf32>
    %156 = vector.extract_strided_slice %151 {offsets = [0, 96], sizes = [1, 32], strides = [1, 1]} : vector<1x128xf32> to vector<1x32xf32>
    %157 = arith.mulf %154, %140 : vector<1x32xf32>
    %158 = arith.mulf %153, %155 : vector<1x32xf32>
    %159 = arith.addf %157, %158 : vector<1x32xf32>
    %160 = math.tanh %159 : vector<1x32xf32>
    %161 = arith.mulf %156, %160 : vector<1x32xf32>
    %c7 = arith.constant 7 : index
    %c0_35 = arith.constant 0 : index
    %162 = vector.load %arg12[%c7, %c0_35] : memref<8x32xf32, #tpu.memory_space<vmem>>, vector<1x32xf32>
    tpu.vector_store %arg12[%c7, %c0_35], %161 {strides = array<i32>} : memref<8x32xf32, #tpu.memory_space<vmem>>, vector<1x32xf32>,
    %c0_36 = arith.constant 0 : index
    %c0_37 = arith.constant 0 : index
    %163 = vector.load %arg12[%c0_36, %c0_37] : memref<8x32xf32, #tpu.memory_space<vmem>>, vector<8x32xf32>
    %c1_38 = arith.constant 1 : index
    %c0_39 = arith.constant 0 : index
    %c0_40 = arith.constant 0 : index
    %164 = vector.load %arg2[%c1_38, %c0_39, %c0_40] : memref<2x32x128xf32, #tpu.memory_space<vmem>>, vector<1x32x128xf32>
    %165 = vector.shape_cast %164 : vector<1x32x128xf32> to vector<32x128xf32>
    %c1_41 = arith.constant 1 : index
    %c0_42 = arith.constant 0 : index
    %c0_43 = arith.constant 0 : index
    %166 = vector.load %arg3[%c1_41, %c0_42, %c0_43] : memref<2x32x128xf32, #tpu.memory_space<vmem>>, vector<1x32x128xf32>
    %167 = vector.shape_cast %166 : vector<1x32x128xf32> to vector<32x128xf32>
    %c1_44 = arith.constant 1 : index
    %c0_45 = arith.constant 0 : index
    %168 = vector.load %arg4[%c1_44, %c0_45] : memref<2x128xf32, #tpu.memory_space<vmem>>, vector<1x128xf32>
    %cst_46 = arith.constant dense<0.000000e+00> : vector<8x128xf32>
    %169 = tpu.matmul %163, %165, %cst_46 {dimension_numbers = #tpu.dot_dimension_numbers<[1], [0], [0], [1], [0, 0, 1, 1], [], []>} : vector<8x32xf32>, vector<32x128xf32>, vector<8x128xf32> -> vector<8x128xf32>
    %170 = vector.broadcast %168 : vector<1x128xf32> to vector<8x128xf32>
    %171 = arith.addf %169, %170 : vector<8x128xf32>
    %cst_47 = arith.constant 0.000000e+00 : f32
    %172 = vector.broadcast %cst_47 : f32 to vector<1x32xf32>
    %cst_48 = arith.constant 0.000000e+00 : f32
    %173 = vector.broadcast %cst_48 : f32 to vector<1x32xf32>
    %174 = vector.extract_strided_slice %171 {offsets = [0, 0], sizes = [1, 128], strides = [1, 1]} : vector<8x128xf32> to vector<1x128xf32>
    %cst_49 = arith.constant dense<0.000000e+00> : vector<1x128xf32>
    %175 = tpu.matmul %172, %167, %cst_49 {dimension_numbers = #tpu.dot_dimension_numbers<[1], [0], [0], [1], [0, 0, 1, 1], [], []>} : vector<1x32xf32>, vector<32x128xf32>, vector<1x128xf32> -> vector<1x128xf32>
    %176 = arith.addf %174, %175 : vector<1x128xf32>
    %177 = arith.negf %176 : vector<1x128xf32>
    %178 = math.exp %177 : vector<1x128xf32>
    %cst_50 = arith.constant 1.000000e+00 : f32
    %179 = vector.broadcast %cst_50 : f32 to vector<1x128xf32>
    %180 = arith.addf %179, %178 : vector<1x128xf32>
    %181 = arith.divf %179, %180 : vector<1x128xf32>
    %182 = math.tanh %176 : vector<1x128xf32>
    %183 = vector.extract_strided_slice %181 {offsets = [0, 0], sizes = [1, 32], strides = [1, 1]} : vector<1x128xf32> to vector<1x32xf32>
    %184 = vector.extract_strided_slice %181 {offsets = [0, 32], sizes = [1, 32], strides = [1, 1]} : vector<1x128xf32> to vector<1x32xf32>
    %185 = vector.extract_strided_slice %182 {offsets = [0, 64], sizes = [1, 32], strides = [1, 1]} : vector<1x128xf32> to vector<1x32xf32>
    %186 = vector.extract_strided_slice %181 {offsets = [0, 96], sizes = [1, 32], strides = [1, 1]} : vector<1x128xf32> to vector<1x32xf32>
    %187 = arith.mulf %184, %173 : vector<1x32xf32>
    %188 = arith.mulf %183, %185 : vector<1x32xf32>
    %189 = arith.addf %187, %188 : vector<1x32xf32>
    %190 = math.tanh %189 : vector<1x32xf32>
    %191 = arith.mulf %186, %190 : vector<1x32xf32>
    %192 = vector.extract_strided_slice %171 {offsets = [1, 0], sizes = [1, 128], strides = [1, 1]} : vector<8x128xf32> to vector<1x128xf32>
    %cst_51 = arith.constant dense<0.000000e+00> : vector<1x128xf32>
    %193 = tpu.matmul %191, %167, %cst_51 {dimension_numbers = #tpu.dot_dimension_numbers<[1], [0], [0], [1], [0, 0, 1, 1], [], []>} : vector<1x32xf32>, vector<32x128xf32>, vector<1x128xf32> -> vector<1x128xf32>
    %194 = arith.addf %192, %193 : vector<1x128xf32>
    %195 = arith.negf %194 : vector<1x128xf32>
    %196 = math.exp %195 : vector<1x128xf32>
    %cst_52 = arith.constant 1.000000e+00 : f32
    %197 = vector.broadcast %cst_52 : f32 to vector<1x128xf32>
    %198 = arith.addf %197, %196 : vector<1x128xf32>
    %199 = arith.divf %197, %198 : vector<1x128xf32>
    %200 = math.tanh %194 : vector<1x128xf32>
    %201 = vector.extract_strided_slice %199 {offsets = [0, 0], sizes = [1, 32], strides = [1, 1]} : vector<1x128xf32> to vector<1x32xf32>
    %202 = vector.extract_strided_slice %199 {offsets = [0, 32], sizes = [1, 32], strides = [1, 1]} : vector<1x128xf32> to vector<1x32xf32>
    %203 = vector.extract_strided_slice %200 {offsets = [0, 64], sizes = [1, 32], strides = [1, 1]} : vector<1x128xf32> to vector<1x32xf32>
    %204 = vector.extract_strided_slice %199 {offsets = [0, 96], sizes = [1, 32], strides = [1, 1]} : vector<1x128xf32> to vector<1x32xf32>
    %205 = arith.mulf %202, %189 : vector<1x32xf32>
    %206 = arith.mulf %201, %203 : vector<1x32xf32>
    %207 = arith.addf %205, %206 : vector<1x32xf32>
    %208 = math.tanh %207 : vector<1x32xf32>
    %209 = arith.mulf %204, %208 : vector<1x32xf32>
    %210 = vector.extract_strided_slice %171 {offsets = [2, 0], sizes = [1, 128], strides = [1, 1]} : vector<8x128xf32> to vector<1x128xf32>
    %cst_53 = arith.constant dense<0.000000e+00> : vector<1x128xf32>
    %211 = tpu.matmul %209, %167, %cst_53 {dimension_numbers = #tpu.dot_dimension_numbers<[1], [0], [0], [1], [0, 0, 1, 1], [], []>} : vector<1x32xf32>, vector<32x128xf32>, vector<1x128xf32> -> vector<1x128xf32>
    %212 = arith.addf %210, %211 : vector<1x128xf32>
    %213 = arith.negf %212 : vector<1x128xf32>
    %214 = math.exp %213 : vector<1x128xf32>
    %cst_54 = arith.constant 1.000000e+00 : f32
    %215 = vector.broadcast %cst_54 : f32 to vector<1x128xf32>
    %216 = arith.addf %215, %214 : vector<1x128xf32>
    %217 = arith.divf %215, %216 : vector<1x128xf32>
    %218 = math.tanh %212 : vector<1x128xf32>
    %219 = vector.extract_strided_slice %217 {offsets = [0, 0], sizes = [1, 32], strides = [1, 1]} : vector<1x128xf32> to vector<1x32xf32>
    %220 = vector.extract_strided_slice %217 {offsets = [0, 32], sizes = [1, 32], strides = [1, 1]} : vector<1x128xf32> to vector<1x32xf32>
    %221 = vector.extract_strided_slice %218 {offsets = [0, 64], sizes = [1, 32], strides = [1, 1]} : vector<1x128xf32> to vector<1x32xf32>
    %222 = vector.extract_strided_slice %217 {offsets = [0, 96], sizes = [1, 32], strides = [1, 1]} : vector<1x128xf32> to vector<1x32xf32>
    %223 = arith.mulf %220, %207 : vector<1x32xf32>
    %224 = arith.mulf %219, %221 : vector<1x32xf32>
    %225 = arith.addf %223, %224 : vector<1x32xf32>
    %226 = math.tanh %225 : vector<1x32xf32>
    %227 = arith.mulf %222, %226 : vector<1x32xf32>
    %228 = vector.extract_strided_slice %171 {offsets = [3, 0], sizes = [1, 128], strides = [1, 1]} : vector<8x128xf32> to vector<1x128xf32>
    %cst_55 = arith.constant dense<0.000000e+00> : vector<1x128xf32>
    %229 = tpu.matmul %227, %167, %cst_55 {dimension_numbers = #tpu.dot_dimension_numbers<[1], [0], [0], [1], [0, 0, 1, 1], [], []>} : vector<1x32xf32>, vector<32x128xf32>, vector<1x128xf32> -> vector<1x128xf32>
    %230 = arith.addf %228, %229 : vector<1x128xf32>
    %231 = arith.negf %230 : vector<1x128xf32>
    %232 = math.exp %231 : vector<1x128xf32>
    %cst_56 = arith.constant 1.000000e+00 : f32
    %233 = vector.broadcast %cst_56 : f32 to vector<1x128xf32>
    %234 = arith.addf %233, %232 : vector<1x128xf32>
    %235 = arith.divf %233, %234 : vector<1x128xf32>
    %236 = math.tanh %230 : vector<1x128xf32>
    %237 = vector.extract_strided_slice %235 {offsets = [0, 0], sizes = [1, 32], strides = [1, 1]} : vector<1x128xf32> to vector<1x32xf32>
    %238 = vector.extract_strided_slice %235 {offsets = [0, 32], sizes = [1, 32], strides = [1, 1]} : vector<1x128xf32> to vector<1x32xf32>
    %239 = vector.extract_strided_slice %236 {offsets = [0, 64], sizes = [1, 32], strides = [1, 1]} : vector<1x128xf32> to vector<1x32xf32>
    %240 = vector.extract_strided_slice %235 {offsets = [0, 96], sizes = [1, 32], strides = [1, 1]} : vector<1x128xf32> to vector<1x32xf32>
    %241 = arith.mulf %238, %225 : vector<1x32xf32>
    %242 = arith.mulf %237, %239 : vector<1x32xf32>
    %243 = arith.addf %241, %242 : vector<1x32xf32>
    %244 = math.tanh %243 : vector<1x32xf32>
    %245 = arith.mulf %240, %244 : vector<1x32xf32>
    %246 = vector.extract_strided_slice %171 {offsets = [4, 0], sizes = [1, 128], strides = [1, 1]} : vector<8x128xf32> to vector<1x128xf32>
    %cst_57 = arith.constant dense<0.000000e+00> : vector<1x128xf32>
    %247 = tpu.matmul %245, %167, %cst_57 {dimension_numbers = #tpu.dot_dimension_numbers<[1], [0], [0], [1], [0, 0, 1, 1], [], []>} : vector<1x32xf32>, vector<32x128xf32>, vector<1x128xf32> -> vector<1x128xf32>
    %248 = arith.addf %246, %247 : vector<1x128xf32>
    %249 = arith.negf %248 : vector<1x128xf32>
    %250 = math.exp %249 : vector<1x128xf32>
    %cst_58 = arith.constant 1.000000e+00 : f32
    %251 = vector.broadcast %cst_58 : f32 to vector<1x128xf32>
    %252 = arith.addf %251, %250 : vector<1x128xf32>
    %253 = arith.divf %251, %252 : vector<1x128xf32>
    %254 = math.tanh %248 : vector<1x128xf32>
    %255 = vector.extract_strided_slice %253 {offsets = [0, 0], sizes = [1, 32], strides = [1, 1]} : vector<1x128xf32> to vector<1x32xf32>
    %256 = vector.extract_strided_slice %253 {offsets = [0, 32], sizes = [1, 32], strides = [1, 1]} : vector<1x128xf32> to vector<1x32xf32>
    %257 = vector.extract_strided_slice %254 {offsets = [0, 64], sizes = [1, 32], strides = [1, 1]} : vector<1x128xf32> to vector<1x32xf32>
    %258 = vector.extract_strided_slice %253 {offsets = [0, 96], sizes = [1, 32], strides = [1, 1]} : vector<1x128xf32> to vector<1x32xf32>
    %259 = arith.mulf %256, %243 : vector<1x32xf32>
    %260 = arith.mulf %255, %257 : vector<1x32xf32>
    %261 = arith.addf %259, %260 : vector<1x32xf32>
    %262 = math.tanh %261 : vector<1x32xf32>
    %263 = arith.mulf %258, %262 : vector<1x32xf32>
    %264 = vector.extract_strided_slice %171 {offsets = [5, 0], sizes = [1, 128], strides = [1, 1]} : vector<8x128xf32> to vector<1x128xf32>
    %cst_59 = arith.constant dense<0.000000e+00> : vector<1x128xf32>
    %265 = tpu.matmul %263, %167, %cst_59 {dimension_numbers = #tpu.dot_dimension_numbers<[1], [0], [0], [1], [0, 0, 1, 1], [], []>} : vector<1x32xf32>, vector<32x128xf32>, vector<1x128xf32> -> vector<1x128xf32>
    %266 = arith.addf %264, %265 : vector<1x128xf32>
    %267 = arith.negf %266 : vector<1x128xf32>
    %268 = math.exp %267 : vector<1x128xf32>
    %cst_60 = arith.constant 1.000000e+00 : f32
    %269 = vector.broadcast %cst_60 : f32 to vector<1x128xf32>
    %270 = arith.addf %269, %268 : vector<1x128xf32>
    %271 = arith.divf %269, %270 : vector<1x128xf32>
    %272 = math.tanh %266 : vector<1x128xf32>
    %273 = vector.extract_strided_slice %271 {offsets = [0, 0], sizes = [1, 32], strides = [1, 1]} : vector<1x128xf32> to vector<1x32xf32>
    %274 = vector.extract_strided_slice %271 {offsets = [0, 32], sizes = [1, 32], strides = [1, 1]} : vector<1x128xf32> to vector<1x32xf32>
    %275 = vector.extract_strided_slice %272 {offsets = [0, 64], sizes = [1, 32], strides = [1, 1]} : vector<1x128xf32> to vector<1x32xf32>
    %276 = vector.extract_strided_slice %271 {offsets = [0, 96], sizes = [1, 32], strides = [1, 1]} : vector<1x128xf32> to vector<1x32xf32>
    %277 = arith.mulf %274, %261 : vector<1x32xf32>
    %278 = arith.mulf %273, %275 : vector<1x32xf32>
    %279 = arith.addf %277, %278 : vector<1x32xf32>
    %280 = math.tanh %279 : vector<1x32xf32>
    %281 = arith.mulf %276, %280 : vector<1x32xf32>
    %282 = vector.extract_strided_slice %171 {offsets = [6, 0], sizes = [1, 128], strides = [1, 1]} : vector<8x128xf32> to vector<1x128xf32>
    %cst_61 = arith.constant dense<0.000000e+00> : vector<1x128xf32>
    %283 = tpu.matmul %281, %167, %cst_61 {dimension_numbers = #tpu.dot_dimension_numbers<[1], [0], [0], [1], [0, 0, 1, 1], [], []>} : vector<1x32xf32>, vector<32x128xf32>, vector<1x128xf32> -> vector<1x128xf32>
    %284 = arith.addf %282, %283 : vector<1x128xf32>
    %285 = arith.negf %284 : vector<1x128xf32>
    %286 = math.exp %285 : vector<1x128xf32>
    %cst_62 = arith.constant 1.000000e+00 : f32
    %287 = vector.broadcast %cst_62 : f32 to vector<1x128xf32>
    %288 = arith.addf %287, %286 : vector<1x128xf32>
    %289 = arith.divf %287, %288 : vector<1x128xf32>
    %290 = math.tanh %284 : vector<1x128xf32>
    %291 = vector.extract_strided_slice %289 {offsets = [0, 0], sizes = [1, 32], strides = [1, 1]} : vector<1x128xf32> to vector<1x32xf32>
    %292 = vector.extract_strided_slice %289 {offsets = [0, 32], sizes = [1, 32], strides = [1, 1]} : vector<1x128xf32> to vector<1x32xf32>
    %293 = vector.extract_strided_slice %290 {offsets = [0, 64], sizes = [1, 32], strides = [1, 1]} : vector<1x128xf32> to vector<1x32xf32>
    %294 = vector.extract_strided_slice %289 {offsets = [0, 96], sizes = [1, 32], strides = [1, 1]} : vector<1x128xf32> to vector<1x32xf32>
    %295 = arith.mulf %292, %279 : vector<1x32xf32>
    %296 = arith.mulf %291, %293 : vector<1x32xf32>
    %297 = arith.addf %295, %296 : vector<1x32xf32>
    %298 = math.tanh %297 : vector<1x32xf32>
    %299 = arith.mulf %294, %298 : vector<1x32xf32>
    %300 = vector.extract_strided_slice %171 {offsets = [7, 0], sizes = [1, 128], strides = [1, 1]} : vector<8x128xf32> to vector<1x128xf32>
    %cst_63 = arith.constant dense<0.000000e+00> : vector<1x128xf32>
    %301 = tpu.matmul %299, %167, %cst_63 {dimension_numbers = #tpu.dot_dimension_numbers<[1], [0], [0], [1], [0, 0, 1, 1], [], []>} : vector<1x32xf32>, vector<32x128xf32>, vector<1x128xf32> -> vector<1x128xf32>
    %302 = arith.addf %300, %301 : vector<1x128xf32>
    %303 = arith.negf %302 : vector<1x128xf32>
    %304 = math.exp %303 : vector<1x128xf32>
    %cst_64 = arith.constant 1.000000e+00 : f32
    %305 = vector.broadcast %cst_64 : f32 to vector<1x128xf32>
    %306 = arith.addf %305, %304 : vector<1x128xf32>
    %307 = arith.divf %305, %306 : vector<1x128xf32>
    %308 = math.tanh %302 : vector<1x128xf32>
    %309 = vector.extract_strided_slice %307 {offsets = [0, 0], sizes = [1, 32], strides = [1, 1]} : vector<1x128xf32> to vector<1x32xf32>
    %310 = vector.extract_strided_slice %307 {offsets = [0, 32], sizes = [1, 32], strides = [1, 1]} : vector<1x128xf32> to vector<1x32xf32>
    %311 = vector.extract_strided_slice %308 {offsets = [0, 64], sizes = [1, 32], strides = [1, 1]} : vector<1x128xf32> to vector<1x32xf32>
    %312 = vector.extract_strided_slice %307 {offsets = [0, 96], sizes = [1, 32], strides = [1, 1]} : vector<1x128xf32> to vector<1x32xf32>
    %313 = arith.mulf %310, %297 : vector<1x32xf32>
    %314 = arith.mulf %309, %311 : vector<1x32xf32>
    %315 = arith.addf %313, %314 : vector<1x32xf32>
    %316 = math.tanh %315 : vector<1x32xf32>
    %317 = arith.mulf %312, %316 : vector<1x32xf32>
    %c0_65 = arith.constant 0 : index
    %c0_66 = arith.constant 0 : index
    %318 = vector.load %arg8[%c0_65, %c0_66] : memref<1x4xf32, #tpu.memory_space<vmem>>, vector<1x4xf32>
    %c0_67 = arith.constant 0 : index
    %c0_68 = arith.constant 0 : index
    %319 = vector.load %arg6[%c0_67, %c0_68] : memref<64x4xf32, #tpu.memory_space<vmem>>, vector<32x4xf32>
    %cst_69 = arith.constant dense<0.000000e+00> : vector<1x4xf32>
    %320 = tpu.matmul %161, %319, %cst_69 {dimension_numbers = #tpu.dot_dimension_numbers<[1], [0], [0], [1], [0, 0, 1, 1], [], []>} : vector<1x32xf32>, vector<32x4xf32>, vector<1x4xf32> -> vector<1x4xf32>
    %321 = arith.addf %318, %320 : vector<1x4xf32>
    %c32 = arith.constant 32 : index
    %c0_70 = arith.constant 0 : index
    %322 = vector.load %arg6[%c32, %c0_70] : memref<64x4xf32, #tpu.memory_space<vmem>>, vector<32x4xf32>
    %cst_71 = arith.constant dense<0.000000e+00> : vector<1x4xf32>
    %323 = tpu.matmul %317, %322, %cst_71 {dimension_numbers = #tpu.dot_dimension_numbers<[1], [0], [0], [1], [0, 0, 1, 1], [], []>} : vector<1x32xf32>, vector<32x4xf32>, vector<1x4xf32> -> vector<1x4xf32>
    %324 = arith.addf %321, %323 : vector<1x4xf32>
    %c0_72 = arith.constant 0 : index
    %c0_73 = arith.constant 0 : index
    %325 = vector.load %arg5[%c0_72, %c0_73] : memref<1x4xf32, #tpu.memory_space<vmem>>, vector<1x4xf32>
    %c0_74 = arith.constant 0 : index
    %c0_75 = arith.constant 0 : index
    %326 = vector.load %arg7[%c0_74, %c0_75] : memref<4x4xf32, #tpu.memory_space<vmem>>, vector<4x4xf32>
    %cst_76 = arith.constant dense<0.000000e+00> : vector<1x4xf32>
    %327 = tpu.matmul %325, %326, %cst_76 {dimension_numbers = #tpu.dot_dimension_numbers<[1], [0], [0], [1], [0, 0, 1, 1], [], []>} : vector<1x4xf32>, vector<4x4xf32>, vector<1x4xf32> -> vector<1x4xf32>
    %328 = arith.addf %324, %327 : vector<1x4xf32>
    %cst_77 = arith.constant 0.000000e+00 : f32
    %329 = vector.broadcast %cst_77 : f32 to vector<1x4xf32>
    %330 = arith.maximumf %328, %329 : vector<1x4xf32>
    %c0_78 = arith.constant 0 : index
    %c0_79 = arith.constant 0 : index
    %331 = vector.load %arg9[%c0_78, %c0_79] : memref<4x1xf32, #tpu.memory_space<vmem>>, vector<4x1xf32>
    %cst_80 = arith.constant dense<0.000000e+00> : vector<1x1xf32>
    %332 = tpu.matmul %330, %331, %cst_80 {dimension_numbers = #tpu.dot_dimension_numbers<[1], [0], [0], [1], [0, 0, 1, 1], [], []>} : vector<1x4xf32>, vector<4x1xf32>, vector<1x1xf32> -> vector<1x1xf32>
    %c0_81 = arith.constant 0 : index
    %c0_82 = arith.constant 0 : index
    %333 = vector.load %arg10[%c0_81, %c0_82] : memref<1x1xf32, #tpu.memory_space<vmem>>, vector<1x1xf32>
    %334 = arith.addf %332, %333 : vector<1x1xf32>
    %c0_83 = arith.constant 0 : index
    %c0_84 = arith.constant 0 : index
    %335 = vector.load %arg11[%c0_83, %c0_84] : memref<1x1xf32, #tpu.memory_space<vmem>>, vector<1x1xf32>
    tpu.vector_store %arg11[%c0_83, %c0_84], %334 {strides = array<i32>} : memref<1x1xf32, #tpu.memory_space<vmem>>, vector<1x1xf32>,
    return
  }
  func.func @transform_0(%arg0: i32) -> (i32, i32) {
    %c0_i32 = arith.constant 0 : i32
    %c0_i32_0 = arith.constant 0 : i32
    %c0_i32_1 = arith.constant 0 : i32
    return %c0_i32, %c0_i32_0 : i32, i32
  }
  func.func @transform_1(%arg0: i32) -> (i32, i32, i32) {
    %c0_i32 = arith.constant 0 : i32
    %c0_i32_0 = arith.constant 0 : i32
    %c0_i32_1 = arith.constant 0 : i32
    %c0_i32_2 = arith.constant 0 : i32
    return %c0_i32, %c0_i32_0, %c0_i32_1 : i32, i32, i32
  }
  func.func @transform_2(%arg0: i32) -> (i32, i32, i32) {
    %c0_i32 = arith.constant 0 : i32
    %c0_i32_0 = arith.constant 0 : i32
    %c0_i32_1 = arith.constant 0 : i32
    %c0_i32_2 = arith.constant 0 : i32
    return %c0_i32, %c0_i32_0, %c0_i32_1 : i32, i32, i32
  }
  func.func @transform_3(%arg0: i32) -> (i32, i32) {
    %c0_i32 = arith.constant 0 : i32
    %c0_i32_0 = arith.constant 0 : i32
    %c0_i32_1 = arith.constant 0 : i32
    return %c0_i32, %c0_i32_0 : i32, i32
  }
  func.func @transform_4(%arg0: i32) -> (i32, i32) {
    %c0_i32 = arith.constant 0 : i32
    %c0_i32_0 = arith.constant 0 : i32
    %c0_i32_1 = arith.constant 0 : i32
    return %c0_i32, %c0_i32_0 : i32, i32
  }
  func.func @transform_5(%arg0: i32) -> (i32, i32) {
    %c0_i32 = arith.constant 0 : i32
    %c0_i32_0 = arith.constant 0 : i32
    %c0_i32_1 = arith.constant 0 : i32
    return %c0_i32, %c0_i32_0 : i32, i32
  }
  func.func @transform_6(%arg0: i32) -> (i32, i32) {
    %c0_i32 = arith.constant 0 : i32
    %c0_i32_0 = arith.constant 0 : i32
    %c0_i32_1 = arith.constant 0 : i32
    return %c0_i32, %c0_i32_0 : i32, i32
  }
  func.func @transform_7(%arg0: i32) -> (i32, i32) {
    %c0_i32 = arith.constant 0 : i32
    %c0_i32_0 = arith.constant 0 : i32
    %c0_i32_1 = arith.constant 0 : i32
    return %c0_i32, %c0_i32_0 : i32, i32
  }
  func.func @transform_8(%arg0: i32) -> (i32, i32) {
    %c0_i32 = arith.constant 0 : i32
    %c0_i32_0 = arith.constant 0 : i32
    %c0_i32_1 = arith.constant 0 : i32
    return %c0_i32, %c0_i32_0 : i32, i32
  }
  func.func @transform_9(%arg0: i32) -> (i32, i32) {
    %c0_i32 = arith.constant 0 : i32
    %c0_i32_0 = arith.constant 0 : i32
    %c0_i32_1 = arith.constant 0 : i32
    return %c0_i32, %c0_i32_0 : i32, i32
  }
  func.func @transform_10(%arg0: i32) -> (i32, i32) {
    %c0_i32 = arith.constant 0 : i32
    %c0_i32_0 = arith.constant 0 : i32
    %c0_i32_1 = arith.constant 0 : i32
    return %c0_i32, %c0_i32_0 : i32, i32
  }
}

</mosaic_0001>

<bundles_post_ra>
// kernel: lstm_model_forward.1
= control target key start
LH: loop header
LB: loop body
LE: loop exit
PB: predicated region body
PF: predicated region fallthrough
CT: control target
= control target key end

     0   :  { %s3372_s0 = inlined_call_operand.vmem [shape: f32[8,32], index: 0, kind: input, shape index: {}]   ;;  %s3373_s1 = inlined_call_operand.vmem [shape: f32[2,32,128], index: 1, kind: input, shape index: {}]   ;;  %s3374_s2 = inlined_call_operand.vmem [shape: f32[2,32,128], index: 2, kind: input, shape index: {}]   ;;  %s3375_s3 = inlined_call_operand.vmem [shape: f32[2,128], index: 3, kind: input, shape index: {}]   ;;  %s3376_s4 = inlined_call_operand.vmem [shape: f32[1,4], index: 4, kind: input, shape index: {}]   ;;  %s3377_s5 = inlined_call_operand.vmem [shape: f32[64,4], index: 5, kind: input, shape index: {}]   ;;  %s3378_s6 = inlined_call_operand.vmem [shape: f32[4,4], index: 6, kind: input, shape index: {}]   ;;  %s3379_s7 = inlined_call_operand.vmem [shape: f32[1,4], index: 7, kind: input, shape index: {}]   ;;  %s3380_s8 = inlined_call_operand.vmem [shape: f32[4,1], index: 8, kind: input, shape index: {}]   ;;  %s3381_s9 = inlined_call_operand.<no memory space> [shape: f32[1,1], index: 9, kind: input, shape index: {}]   ;;  %s3382_s10 = inlined_call_operand.hbm [shape: f32[1,1], index: 10, kind: output, shape index: {}]  }
   0x1   :  { %v15_v0 = vstv %s3381_s9 }
   0x2   :  { %16 = vst [vmem:[#allocation3] sm:$0x1] %v15_v0 }
   0x3   :  { %v39_v1 = vld [vmem:[%s3373_s1] sm:$0xff]  ;;  %v40_v2 = vld [vmem:[%s3373_s1 + $0x8] sm:$0xff]  ;;  %v41_v3 = vld [vmem:[%s3373_s1 + $0x10] sm:$0xff]  ;;  %v2946_v4 = vmov 0.0|0.0   ;;  %vm2947_vm0 = vmmov 0   ;;  %v2948_v7 = vmov 0.0  }
   0x4   :  { %2663 = vmatprep.subr.bf16.mxu1 %v2946_v4  ;;  %v2664_v5 = vpack.c.bf16 %v40_v2, %v39_v1  ;;  %v42_v6 = vld [vmem:[%s3373_s1 + $0x18] sm:$0xff]  ;;  %2441 = vmatprep.mubr.msk.f32.mxu1 %vm2947_vm0, %v2948_v7  ;;  %v43_v8 = vld [vmem:[%s3374_s2] sm:$0xff]  ;;  %v44_v9 = vld [vmem:[%s3374_s2 + $0x8] sm:$0xff] }
   0x5   :  { %2675 = vmatprep.subr.bf16.mxu0 %v2946_v4  ;;  %2463 = vmatprep.mubr.msk.f32.mxu0 %vm2947_vm0, %v2948_v7  ;;  %v2667_v10 = vpack.c.bf16 %v42_v6, %v41_v3  ;;  %v3034_v11 = vpack.c.bf16 %v44_v9, %v43_v8 }
   0x6   :  { %2665 = vmatpush3.bf16.msra.mxu1 %v2664_v5 }
   0x7   :  { %17 = vsyncpa [#allocation5], 0  ;;  %2666 = vmatprep.subr.bf16.mxu1 %v2946_v4  ;;  %v45_v12 = vld [vmem:[%s3374_s2 + $0x10] sm:$0xff]  ;;  %v46_v13 = vld [vmem:[%s3374_s2 + $0x18] sm:$0xff]  ;;  %2677 = vmatpush3.bf16.msra.mxu0 %v3034_v11  ;;  %vm52_vm1 = vcmask 261120   ;;  %s2949_s13 = smov 64  }
   0x8   :  { %2678 = vmatprep.subr.bf16.mxu0 %v2946_v4  ;;  %v38_v14 = vld [vmem:[%s3372_s0] sm:$0xff]  ;;  %v3048_v15 = vpack.c.bf16 %v46_v13, %v45_v12  ;;  %s2950_s14 = smov 32   ;;  %vm228_vm2 = vcmask 253952   ;;  %vm337_vm3 = vcmask 254977   ;;  %vm561_vm4 = vcmask 257027   ;;  %s2951_s29 = smov [#allocation4]  }
   0x9   :  { %v2281_v18 = vld [vmem:[%s3375_s3] ss:$0 sm:$0xff]  ;;  %vm785_vm5 = vcmask 259077   ;;  %vm449_vm6 = vcmask 256002   ;;  %vm673_vm7 = vcmask 258052   ;;  %vm897_vm8 = vcmask 260102  }
   0xa   :  { %2668 = vmatpush3.bf16.msra.mxu1 %v2667_v10  ;;  %vm1009_vm9 = vcmask 261127   ;;  %vm2111_vm10 = vcmask 1043456   ;;  %vm2107_vm11 = vcmask 31744   ;;  %vm2265_vm12 = vcmask 0  }
   0xb   :  { %2669 = vmatprep.subr.bf16.mxu1 %v2946_v4  ;;  %2680 = vmatpush3.bf16.msra.mxu0 %v3048_v15 }
   0xc   :  { %2687 = vmatprep.subr.bf16.mxu0 %v2946_v4 }
   0xd   :  { %2442 = vmatmul.mubr.msk.f32.vlgmr.msra.gmra.mrb[0].mxu1 %vm52_vm1, %v38_v14 }
   0xe   :  { %2671 = vmatpush3.bf16.msra.mxu1 %v3034_v11  ;;  %2452 = vmatprep.mubr.msk.f32.mxu1 %vm2947_vm0, %v2948_v7 }
   0xf   :  { %2672 = vmatprep.subr.bf16.mxu1 %v2946_v4 }
  0x12   :  { %2674 = vmatpush3.bf16.msra.mxu1 %v3048_v15 }
  0x13   :  { %2681 = vmatprep.subr.bf16.mxu1 %v2946_v4 }
  0x15   :  { %2453 = vmatmul.mubr.f32.vlgmr.msra.gmra.mrb[2].mxu1 %v2948_v7 }
  0x16   :  { %2683 = vmatpush3.bf16.msra.mxu1 %v3034_v11  ;;  %2474 = vmatprep.mubr.msk.f32.mxu1 %vm2947_vm0, %v2948_v7 }
  0x17   :  { %2684 = vmatprep.subr.bf16.mxu1 %v2946_v4 }
  0x1a   :  { %2686 = vmatpush3.bf16.msra.mxu1 %v3048_v15 }
  0x1b   :  { %2693 = vmatprep.subr.bf16.mxu1 %v2946_v4 }
  0xe0   :  { %v122_v16 = vpop.f32.mrb[0].mxu1 }
  0xe1   :  { %v2443_v17 = vpop.f32.mrb[1].mxu1  ;;  %v3070_v19 = vadd.f32 %v2281_v18, %v122_v16 }
  0xe8   :  { %v195_v20 = vpop.f32.mrb[2].mxu1 }
  0xe9   :  { %v199_v21 = vadd.f32 %v195_v20, %v3070_v19  ;;  %v2454_v22 = vpop.f32.mrb[3].mxu1 }
  0xeb   :  { %2794 = vtanh.f32 %v199_v21  ;;  %v2283_v24 = vmul.f32 -1.442695, %v199_v21 }
  0xed   :  { %2796 = vpow2.f32 %v2283_v24 }
  0xf5   :  { %v2795_v23 = vpop.eup %2794 }
  0xf6   :  { %209 = vrot.lane.b32.xlu0 %v2795_v23, %s2949_s13 }
  0xf7   :  { %v2797_v25 = vpop.eup %2796 }
  0xf8   :  { %v203_v26 = vadd.f32 1.0, %v2797_v25 }
  0xfa   :  { %2798 = vrcp.f32 %v203_v26 }
 0x104   :  { %v2799_v27 = vpop.eup %2798 }
 0x105   :  { %v207_v30 = vmul.f32 0.0, %v2799_v27 }
 0x168   :  { %v210_v28 = vpop.permute.xlu0 %209 }
 0x169   :  { %v212_v29 = vmul.f32 %v2799_v27, %v210_v28 }
 0x16b   :  { %214 = vrot.lane.b32.xlu0 %v212_v29, %s2950_s14 }
 0x1dd   :  { %v215_v31 = vpop.permute.xlu0 %214 }
 0x1de   :  { %v217_v32 = vadd.f32 %v215_v31, %v207_v30 }
 0x1e0   :  { %2800 = vtanh.f32 %v217_v32  ;;  %v314_v48 = vrot.slane %v217_v32, 7 }
 0x1ea   :  { %v2801_v33 = vpop.eup %2800 }
 0x1eb   :  { %220 = vrot.lane.b32.xlu1 %v2801_v33, %s2949_s13 }
 0x25d   :  { %v221_v34 = vpop.permute.xlu1 %220 }
 0x25e   :  { %v223_v35 = vmul.f32 %v2799_v27, %v221_v34 }
 0x260   :  { %225 = vrot.lane.b32.xlu1 %v223_v35, %s2950_s14 }
 0x2d2   :  { %v226_v36 = vpop.permute.xlu1 %225 }
 0x2d3   :  { %229 = vst.msk [vmem:[#allocation2] sm:$0x1] %vm228_vm2, %v226_v36  ;;  %2464 = vmatmul.mubr.msk.f32.vlgmr.msra.gmra.mrb[0].mxu0 %vm52_vm1, %v226_v36 }
 0x2d4   :  { %2689 = vmatpush3.bf16.msra.mxu0 %v3034_v11  ;;  %2485 = vmatprep.mubr.msk.f32.mxu0 %vm2947_vm0, %v2948_v7 }
 0x2d5   :  { %2690 = vmatprep.subr.bf16.mxu0 %v2946_v4 }
 0x2d8   :  { %2692 = vmatpush3.bf16.msra.mxu0 %v3048_v15 }
 0x2d9   :  { %2699 = vmatprep.subr.bf16.mxu0 %v2946_v4 }
 0x3a6   :  { %v298_v37 = vpop.f32.mrb[0].mxu0 }
 0x3a7   :  { %v303_v38 = vrot.slane %v298_v37, 7  ;;  %v2465_v39 = vpop.f32.mrb[1].mxu0 }
 0x3a9   :  { %v305_v40 = vadd.f32 %v303_v38, %v3070_v19 }
 0x3ab   :  { %2802 = vtanh.f32 %v305_v40  ;;  %v2285_v42 = vmul.f32 -1.442695, %v305_v40 }
 0x3ad   :  { %2804 = vpow2.f32 %v2285_v42 }
 0x3b5   :  { %v2803_v41 = vpop.eup %2802 }
 0x3b6   :  { %318 = vrot.lane.b32.xlu0 %v2803_v41, %s2949_s13 }
 0x3b7   :  { %v2805_v43 = vpop.eup %2804 }
 0x3b8   :  { %v309_v44 = vadd.f32 1.0, %v2805_v43 }
 0x3ba   :  { %2806 = vrcp.f32 %v309_v44 }
 0x3c4   :  { %v2807_v45 = vpop.eup %2806 }
 0x3c5   :  { %v316_v49 = vmul.f32 %v2807_v45, %v314_v48 }
 0x428   :  { %v319_v46 = vpop.permute.xlu0 %318 }
 0x429   :  { %v321_v47 = vmul.f32 %v2807_v45, %v319_v46 }
 0x42b   :  { %323 = vrot.lane.b32.xlu1 %v321_v47, %s2950_s14 }
 0x49d   :  { %v324_v50 = vpop.permute.xlu1 %323 }
 0x49e   :  { %v326_v51 = vadd.f32 %v324_v50, %v316_v49 }
 0x4a0   :  { %2808 = vtanh.f32 %v326_v51  ;;  %v426_v5 = vrot.slane %v326_v51, 7 }
 0x4aa   :  { %v2809_v52 = vpop.eup %2808 }
 0x4ab   :  { %329 = vrot.lane.b32.xlu0 %v2809_v52, %s2949_s13 }
 0x51d   :  { %v330_v53 = vpop.permute.xlu0 %329 }
 0x51e   :  { %v3088_v54 = vmul.f32 %v2807_v45, %v330_v53 }
 0x520   :  { %v339_v55 = vrot.slane %v3088_v54, 1 }
 0x522   :  { %340 = vrot.lane.b32.xlu1 %v339_v55, %s2950_s14 }
 0x594   :  { %v341_v56 = vpop.permute.xlu1 %340 }
 0x595   :  { %2475 = vmatmul.mubr.msk.f32.vlgmr.msra.gmra.mrb[4].mxu1 %vm52_vm1, %v341_v56 }
 0x596   :  { %2695 = vmatpush3.bf16.msra.mxu1 %v3034_v11  ;;  %2496 = vmatprep.mubr.msk.f32.mxu1 %vm2947_vm0, %v2948_v7 }
 0x597   :  { %2696 = vmatprep.subr.bf16.mxu1 %v2946_v4 }
 0x59a   :  { %2698 = vmatpush3.bf16.msra.mxu1 %v3048_v15 }
 0x59b   :  { %2705 = vmatprep.subr.bf16.mxu1 %v2946_v4 }
 0x668   :  { %v410_v57 = vpop.f32.mrb[4].mxu1 }
 0x669   :  { %v415_v58 = vrot.slane %v410_v57, 6  ;;  %v2476_v59 = vpop.f32.mrb[5].mxu1 }
 0x66b   :  { %v417_v60 = vadd.f32 %v415_v58, %v3070_v19 }
 0x66d   :  { %2810 = vtanh.f32 %v417_v60  ;;  %v2287_v62 = vmul.f32 -1.442695, %v417_v60 }
 0x66f   :  { %2812 = vpow2.f32 %v2287_v62 }
 0x677   :  { %v2811_v61 = vpop.eup %2810 }
 0x678   :  { %430 = vrot.lane.b32.xlu0 %v2811_v61, %s2949_s13 }
 0x679   :  { %v2813_v63 = vpop.eup %2812 }
 0x67a   :  { %v421_v0 = vadd.f32 1.0, %v2813_v63 }
 0x67c   :  { %2814 = vrcp.f32 %v421_v0 }
 0x686   :  { %v2815_v1 = vpop.eup %2814 }
 0x687   :  { %v428_v6 = vmul.f32 %v2815_v1, %v426_v5 }
 0x6ea   :  { %v431_v2 = vpop.permute.xlu0 %430 }
 0x6eb   :  { %v433_v3 = vmul.f32 %v2815_v1, %v431_v2 }
 0x6ed   :  { %435 = vrot.lane.b32.xlu1 %v433_v3, %s2950_s14 }
 0x75f   :  { %v436_v8 = vpop.permute.xlu1 %435 }
 0x760   :  { %v438_v9 = vadd.f32 %v436_v8, %v428_v6 }
 0x762   :  { %2816 = vtanh.f32 %v438_v9  ;;  %v538_v29 = vrot.slane %v438_v9, 7 }
 0x76c   :  { %v2817_v10 = vpop.eup %2816 }
 0x76d   :  { %441 = vrot.lane.b32.xlu0 %v2817_v10, %s2949_s13 }
 0x7df   :  { %v442_v12 = vpop.permute.xlu0 %441 }
 0x7e0   :  { %v3103_v13 = vmul.f32 %v2815_v1, %v442_v12 }
 0x7e2   :  { %v451_v14 = vrot.slane %v3103_v13, 2 }
 0x7e4   :  { %452 = vrot.lane.b32.xlu1 %v451_v14, %s2950_s14 }
 0x856   :  { %v453_v16 = vpop.permute.xlu1 %452 }
 0x857   :  { %2486 = vmatmul.mubr.msk.f32.vlgmr.msra.gmra.mrb[2].mxu0 %vm52_vm1, %v453_v16 }
 0x858   :  { %2701 = vmatpush3.bf16.msra.mxu0 %v3034_v11  ;;  %2507 = vmatprep.mubr.msk.f32.mxu0 %vm2947_vm0, %v2948_v7 }
 0x859   :  { %2702 = vmatprep.subr.bf16.mxu0 %v2946_v4 }
 0x85c   :  { %2704 = vmatpush3.bf16.msra.mxu0 %v3048_v15 }
 0x85d   :  { %2711 = vmatprep.subr.bf16.mxu0 %v2946_v4 }
 0x92a   :  { %v522_v17 = vpop.f32.mrb[2].mxu0 }
 0x92b   :  { %v527_v18 = vrot.slane %v522_v17, 5  ;;  %v2487_v20 = vpop.f32.mrb[3].mxu0 }
 0x92d   :  { %v529_v21 = vadd.f32 %v527_v18, %v3070_v19 }
 0x92f   :  { %2818 = vtanh.f32 %v529_v21  ;;  %v2289_v23 = vmul.f32 -1.442695, %v529_v21 }
 0x931   :  { %2820 = vpow2.f32 %v2289_v23 }
 0x939   :  { %v2819_v22 = vpop.eup %2818 }
 0x93a   :  { %542 = vrot.lane.b32.xlu0 %v2819_v22, %s2949_s13 }
 0x93b   :  { %v2821_v24 = vpop.eup %2820 }
 0x93c   :  { %v533_v25 = vadd.f32 1.0, %v2821_v24 }
 0x93e   :  { %2822 = vrcp.f32 %v533_v25 }
 0x948   :  { %v2823_v26 = vpop.eup %2822 }
 0x949   :  { %v540_v30 = vmul.f32 %v2823_v26, %v538_v29 }
 0x9ac   :  { %v543_v27 = vpop.permute.xlu0 %542 }
 0x9ad   :  { %v545_v28 = vmul.f32 %v2823_v26, %v543_v27 }
 0x9af   :  { %547 = vrot.lane.b32.xlu1 %v545_v28, %s2950_s14 }
 0xa21   :  { %v548_v31 = vpop.permute.xlu1 %547 }
 0xa22   :  { %v550_v32 = vadd.f32 %v548_v31, %v540_v30 }
 0xa24   :  { %2824 = vtanh.f32 %v550_v32  ;;  %v650_v49 = vrot.slane %v550_v32, 7 }
 0xa2e   :  { %v2825_v33 = vpop.eup %2824 }
 0xa2f   :  { %553 = vrot.lane.b32.xlu0 %v2825_v33, %s2949_s13 }
 0xaa1   :  { %v554_v34 = vpop.permute.xlu0 %553 }
 0xaa2   :  { %v3118_v35 = vmul.f32 %v2823_v26, %v554_v34 }
 0xaa4   :  { %v563_v36 = vrot.slane %v3118_v35, 3 }
 0xaa6   :  { %564 = vrot.lane.b32.xlu1 %v563_v36, %s2950_s14 }
 0xb18   :  { %v565_v37 = vpop.permute.xlu1 %564 }
 0xb19   :  { %2497 = vmatmul.mubr.msk.f32.vlgmr.msra.gmra.mrb[6].mxu1 %vm52_vm1, %v565_v37 }
 0xb1a   :  { %2707 = vmatpush3.bf16.msra.mxu1 %v3034_v11  ;;  %2518 = vmatprep.mubr.msk.f32.mxu1 %vm2947_vm0, %v2948_v7 }
 0xb1b   :  { %2708 = vmatprep.subr.bf16.mxu1 %v2946_v4 }
 0xb1e   :  { %2710 = vmatpush3.bf16.msra.mxu1 %v3048_v15 }
 0xb1f   :  { %2717 = vmatprep.subr.bf16.mxu1 %v2946_v4 }
 0xbec   :  { %v634_v38 = vpop.f32.mrb[6].mxu1 }
 0xbed   :  { %v639_v39 = vrot.slane %v634_v38, 4  ;;  %v2498_v40 = vpop.f32.mrb[7].mxu1 }
 0xbef   :  { %v641_v41 = vadd.f32 %v639_v39, %v3070_v19 }
 0xbf1   :  { %2826 = vtanh.f32 %v641_v41  ;;  %v2291_v43 = vmul.f32 -1.442695, %v641_v41 }
 0xbf3   :  { %2828 = vpow2.f32 %v2291_v43 }
 0xbfb   :  { %v2827_v42 = vpop.eup %2826 }
 0xbfc   :  { %654 = vrot.lane.b32.xlu0 %v2827_v42, %s2949_s13 }
 0xbfd   :  { %v2829_v44 = vpop.eup %2828 }
 0xbfe   :  { %v645_v45 = vadd.f32 1.0, %v2829_v44 }
 0xc00   :  { %2830 = vrcp.f32 %v645_v45 }
 0xc0a   :  { %v2831_v46 = vpop.eup %2830 }
 0xc0b   :  { %v652_v50 = vmul.f32 %v2831_v46, %v650_v49 }
 0xc6e   :  { %v655_v47 = vpop.permute.xlu0 %654 }
 0xc6f   :  { %v657_v48 = vmul.f32 %v2831_v46, %v655_v47 }
 0xc71   :  { %659 = vrot.lane.b32.xlu1 %v657_v48, %s2950_s14 }
 0xce3   :  { %v660_v51 = vpop.permute.xlu1 %659 }
 0xce4   :  { %v662_v52 = vadd.f32 %v660_v51, %v652_v50 }
 0xce6   :  { %2832 = vtanh.f32 %v662_v52 }
 0xcf0   :  { %v2833_v53 = vpop.eup %2832 }
 0xcf1   :  { %665 = vrot.lane.b32.xlu0 %v2833_v53, %s2949_s13 }
 0xd63   :  { %v666_v55 = vpop.permute.xlu0 %665 }
 0xd64   :  { %v3133_v56 = vmul.f32 %v2831_v46, %v666_v55 }
 0xd66   :  { %v675_v57 = vrot.slane %v3133_v56, 4 }
 0xd68   :  { %676 = vrot.lane.b32.xlu1 %v675_v57, %s2950_s14 }
 0xdda   :  { %v677_v58 = vpop.permute.xlu1 %676 }
 0xddb   :  { %2508 = vmatmul.mubr.msk.f32.vlgmr.msra.gmra.mrb[4].mxu0 %vm52_vm1, %v677_v58 }
 0xddc   :  { %2713 = vmatpush3.bf16.msra.mxu0 %v3034_v11  ;;  %2529 = vmatprep.mubr.msk.f32.mxu0 %vm2947_vm0, %v2948_v7 }
 0xddd   :  { %2714 = vmatprep.subr.bf16.mxu0 %v2946_v4 }
 0xde0   :  { %2716 = vmatpush3.bf16.msra.mxu0 %v3048_v15  ;;  %v762_v15 = vrot.slane %v662_v52, 7 }
 0xde1   :  { %2723 = vmatprep.subr.bf16.mxu0 %v2946_v4 }
 0xeae   :  { %v746_v59 = vpop.f32.mrb[4].mxu0 }
 0xeaf   :  { %v751_v60 = vrot.slane %v746_v59, 3  ;;  %v2509_v61 = vpop.f32.mrb[5].mxu0 }
 0xeb0   :  { %v2302_v61 = vld [vmem:[%s3374_s2 + $0x20] sm:$0xff] }
 0xeb1   :  { %v753_v62 = vadd.f32 %v751_v60, %v3070_v19 }
 0xeb3   :  { %2834 = vtanh.f32 %v753_v62  ;;  %v2293_v0 = vmul.f32 -1.442695, %v753_v62  ;;  %v2300_v62 = vld [vmem:[%s3373_s1 + $0x30] sm:$0xff] }
 0xeb5   :  { %2836 = vpow2.f32 %v2293_v0  ;;  %v2304_v0 = vld [vmem:[%s3374_s2 + $0x30] sm:$0xff] }
 0xebd   :  { %v2835_v63 = vpop.eup %2834 }
 0xebe   :  { %766 = vrot.lane.b32.xlu0 %v2835_v63, %s2949_s13  ;;  %v2301_v63 = vld [vmem:[%s3373_s1 + $0x38] sm:$0xff] }
 0xebf   :  { %v2837_v11 = vpop.eup %2836 }
 0xec0   :  { %v757_v1 = vadd.f32 1.0, %v2837_v11  ;;  %v2721_v11 = vpack.c.bf16 %v2301_v63, %v2300_v62 }
 0xec2   :  { %2838 = vrcp.f32 %v757_v1  ;;  %v2305_v1 = vld [vmem:[%s3374_s2 + $0x38] sm:$0xff] }
 0xecc   :  { %v2839_v2 = vpop.eup %2838 }
 0xecd   :  { %v764_v6 = vmul.f32 %v2839_v2, %v762_v15 }
 0xf30   :  { %v767_v3 = vpop.permute.xlu0 %766 }
 0xf31   :  { %v769_v5 = vmul.f32 %v2839_v2, %v767_v3 }
 0xf33   :  { %771 = vrot.lane.b32.xlu1 %v769_v5, %s2950_s14 }
 0xfa5   :  { %v772_v8 = vpop.permute.xlu1 %771 }
 0xfa6   :  { %v774_v9 = vadd.f32 %v772_v8, %v764_v6 }
 0xfa8   :  { %2840 = vtanh.f32 %v774_v9  ;;  %v874_v30 = vrot.slane %v774_v9, 7 }
 0xfb2   :  { %v2841_v10 = vpop.eup %2840 }
 0xfb3   :  { %777 = vrot.lane.b32.xlu0 %v2841_v10, %s2949_s13 }
0x1025   :  { %v778_v12 = vpop.permute.xlu0 %777 }
0x1026   :  { %v780_v14 = vmul.f32 %v2839_v2, %v778_v12  ;;  %v3202_v2 = vpack.c.bf16 %v2305_v1, %v2304_v0 }
0x1028   :  { %v787_v16 = vrot.slane %v780_v14, 5 }
0x102a   :  { %788 = vrot.lane.b32.xlu1 %v787_v16, %s2950_s14  ;;  %v2306_v16 = vld [vmem:[%s3375_s3 + $0x1] ss:$0 sm:$0xff] }
0x109c   :  { %v789_v17 = vpop.permute.xlu1 %788 }
0x109d   :  { %2519 = vmatmul.mubr.msk.f32.vlgmr.msra.gmra.mrb[8].mxu1 %vm52_vm1, %v789_v17 }
0x109e   :  { %2540 = vmatprep.mubr.msk.f32.mxu1 %vm2947_vm0, %v2948_v7 }
0x1170   :  { %v858_v18 = vpop.f32.mrb[8].mxu1 }
0x1171   :  { %v863_v20 = vrot.slane %v858_v18, 2  ;;  %v2520_v21 = vpop.f32.mrb[9].mxu1 }
0x1173   :  { %v865_v22 = vadd.f32 %v863_v20, %v3070_v19 }
0x1175   :  { %2842 = vtanh.f32 %v865_v22  ;;  %v2295_v24 = vmul.f32 -1.442695, %v865_v22 }
0x1177   :  { %2844 = vpow2.f32 %v2295_v24 }
0x117f   :  { %v2843_v23 = vpop.eup %2842 }
0x1180   :  { %878 = vrot.lane.b32.xlu0 %v2843_v23, %s2949_s13 }
0x1181   :  { %v2845_v25 = vpop.eup %2844 }
0x1182   :  { %v869_v26 = vadd.f32 1.0, %v2845_v25 }
0x1184   :  { %2846 = vrcp.f32 %v869_v26 }
0x118e   :  { %v2847_v27 = vpop.eup %2846 }
0x118f   :  { %v876_v31 = vmul.f32 %v2847_v27, %v874_v30 }
0x11f2   :  { %v879_v28 = vpop.permute.xlu0 %878 }
0x11f3   :  { %v881_v29 = vmul.f32 %v2847_v27, %v879_v28 }
0x11f5   :  { %883 = vrot.lane.b32.xlu1 %v881_v29, %s2950_s14 }
0x1267   :  { %v884_v32 = vpop.permute.xlu1 %883 }
0x1268   :  { %v886_v33 = vadd.f32 %v884_v32, %v876_v31 }
0x126a   :  { %2848 = vtanh.f32 %v886_v33 }
0x1274   :  { %v2849_v34 = vpop.eup %2848 }
0x1275   :  { %889 = vrot.lane.b32.xlu0 %v2849_v34, %s2949_s13 }
0x12e7   :  { %v890_v36 = vpop.permute.xlu0 %889 }
0x12e8   :  { %v892_v37 = vmul.f32 %v2847_v27, %v890_v36 }
0x12ea   :  { %v899_v38 = vrot.slane %v892_v37, 6 }
0x12ec   :  { %900 = vrot.lane.b32.xlu1 %v899_v38, %s2950_s14 }
0x135e   :  { %v901_v39 = vpop.permute.xlu1 %900 }
0x135f   :  { %2530 = vmatmul.mubr.msk.f32.vlgmr.msra.gmra.mrb[6].mxu0 %vm52_vm1, %v901_v39 }
0x1360   :  { %2551 = vmatprep.mubr.msk.f32.mxu0 %vm2947_vm0, %v2948_v7 }
0x1432   :  { %v970_v40 = vpop.f32.mrb[6].mxu0 }
0x1433   :  { %v975_v41 = vrot.slane %v970_v40, 1  ;;  %v2531_v42 = vpop.f32.mrb[7].mxu0 }
0x1435   :  { %v977_v43 = vadd.f32 %v975_v41, %v3070_v19  ;;  %v986_v19 = vrot.slane %v886_v33, 7 }
0x1437   :  { %2850 = vtanh.f32 %v977_v43  ;;  %v2297_v45 = vmul.f32 -1.442695, %v977_v43 }
0x1439   :  { %2852 = vpow2.f32 %v2297_v45 }
0x1441   :  { %v2851_v44 = vpop.eup %2850 }
0x1442   :  { %990 = vrot.lane.b32.xlu0 %v2851_v44, %s2949_s13 }
0x1443   :  { %v2853_v46 = vpop.eup %2852 }
0x1444   :  { %v981_v47 = vadd.f32 1.0, %v2853_v46 }
0x1446   :  { %2854 = vrcp.f32 %v981_v47 }
0x1450   :  { %v2855_v48 = vpop.eup %2854 }
0x1451   :  { %v988_v51 = vmul.f32 %v2855_v48, %v986_v19 }
0x14b4   :  { %v991_v49 = vpop.permute.xlu0 %990 }
0x14b5   :  { %v993_v50 = vmul.f32 %v2855_v48, %v991_v49 }
0x14b7   :  { %995 = vrot.lane.b32.xlu1 %v993_v50, %s2950_s14 }
0x14bb   :  { %334 = vrot.lane.b32.xlu1 %v3088_v54, %s2950_s14  ;;  %v2298_v54 = vld [vmem:[%s3373_s1 + $0x20] sm:$0xff] }
0x14bf   :  { %558 = vrot.lane.b32.xlu1 %v3118_v35, %s2950_s14  ;;  %v2299_v35 = vld [vmem:[%s3373_s1 + $0x28] sm:$0xff]  ;;  %s2273_s1 = sshll.u32 %s2951_s29, 4  ;;  %s2274_s1 = int_to_ptr.vmem [resolvable:$true] %s2273_s1 }
0x14c0   :  { %v2718_v60 = vpack.c.bf16 %v2299_v35, %v2298_v54  ;;  %p2927_p1 = scmp.lt.s32.totalorder %s2274_s1, %s2274_s1 }
0x14c2   :  { %2719 = vmatpush3.bf16.msra.mxu1 %v2718_v60 }
0x14c3   :  { %782 = vrot.lane.b32.xlu1 %v780_v14, %s2950_s14  ;;  %2720 = vmatprep.subr.bf16.mxu1 %v2946_v4 }
0x14c6   :  { %2722 = vmatpush3.bf16.msra.mxu1 %v2721_v11 }
0x14c7   :  { %2729 = vmatprep.subr.bf16.mxu1 %v2946_v4 }
0x1529   :  { %v996_v52 = vpop.permute.xlu1 %995 }
0x152a   :  { %v998_v53 = vadd.f32 %v996_v52, %v988_v51 }
0x152c   :  { %2856 = vtanh.f32 %v998_v53 }
0x152d   :  { %v335_v55 = vpop.permute.xlu1 %334 }
0x152e   :  { %338 = vst.msk [vmem:[#allocation2] sm:$0x2] %vm337_vm3, %v335_v55 }
0x1531   :  { %v559_v57 = vpop.permute.xlu1 %558 }
0x1532   :  { %562 = vst.msk [vmem:[#allocation2] sm:$0x8] %vm561_vm4, %v559_v57 }
0x1535   :  { %v783_v58 = vpop.permute.xlu1 %782 }
0x1536   :  { %v2857_v59 = vpop.eup %2856  ;;  %786 = vst.msk [vmem:[#allocation2] sm:$0x20] %vm785_vm5, %v783_v58 }
0x1537   :  { %1001 = vrot.lane.b32.xlu0 %v2857_v59, %s2949_s13 }
0x153b   :  { %446 = vrot.lane.b32.xlu0 %v3103_v13, %s2950_s14  ;;  %v2303_v13 = vld [vmem:[%s3374_s2 + $0x28] sm:$0xff] }
0x153f   :  { %670 = vrot.lane.b32.xlu0 %v3133_v56, %s2950_s14  ;;  %v3186_v56 = vpack.c.bf16 %v2303_v13, %v2302_v61 }
0x1541   :  { %2725 = vmatpush3.bf16.msra.mxu0 %v3186_v56 }
0x1542   :  { %2726 = vmatprep.subr.bf16.mxu0 %v2946_v4 }
0x1543   :  { %894 = vrot.lane.b32.xlu0 %v892_v37, %s2950_s14 }
0x1545   :  { %2728 = vmatpush3.bf16.msra.mxu0 %v3202_v2 }
0x1546   :  { %2735 = vmatprep.subr.bf16.mxu0 %v2946_v4 }
0x1548   :  { %2552 = vmatmul.mubr.f32.vlgmr.msra.gmra.mrb[8].mxu0 %v2948_v7 }
0x1549   :  { %2737 = vmatpush3.bf16.msra.mxu0 %v3186_v56  ;;  %2573 = vmatprep.mubr.msk.f32.mxu0 %vm2947_vm0, %v2948_v7 }
0x154a   :  { %2738 = vmatprep.subr.bf16.mxu0 %v2946_v4 }
0x154d   :  { %2740 = vmatpush3.bf16.msra.mxu0 %v3202_v2 }
0x154e   :  { %2747 = vmatprep.subr.bf16.mxu0 %v2946_v4 }
0x15a9   :  { %v1002_v3 = vpop.permute.xlu0 %1001 }
0x15aa   :  { %v3212_v5 = vmul.f32 %v2855_v48, %v1002_v3 }
0x15ac   :  { %1006 = vrot.lane.b32.xlu1 %v3212_v5, %s2950_s14 }
0x15ad   :  { %v447_v15 = vpop.permute.xlu0 %446 }
0x15ae   :  { %450 = vst.msk [vmem:[#allocation2] sm:$0x4] %vm449_vm6, %v447_v15 }
0x15b1   :  { %v671_v6 = vpop.permute.xlu0 %670 }
0x15b2   :  { %674 = vst.msk [vmem:[#allocation2] sm:$0x10] %vm673_vm7, %v671_v6 }
0x15b5   :  { %v895_v8 = vpop.permute.xlu0 %894 }
0x15b6   :  { %898 = vst.msk [vmem:[#allocation2] sm:$0x40] %vm897_vm8, %v895_v8 }
0x161b   :  { %v1166_v12 = vpop.f32.mrb[8].mxu0 }
0x161c   :  { %v2553_v14 = vpop.f32.mrb[9].mxu0 }
0x161e   :  { %v1007_v9 = vpop.permute.xlu1 %1006 }
0x161f   :  { %1010 = vst.msk [vmem:[#allocation2] sm:$0x80] %vm1009_vm9, %v1007_v9 }
0x1626   :  { %v1011_v10 = vld [vmem:[#allocation2] sm:$0xff] }
0x1627   :  { %2541 = vmatmul.mubr.msk.f32.vlgmr.msra.gmra.mrb[10].mxu1 %vm52_vm1, %v1011_v10 }
0x1628   :  { %2731 = vmatpush3.bf16.msra.mxu1 %v3186_v56  ;;  %2562 = vmatprep.mubr.msk.f32.mxu1 %vm2947_vm0, %v2948_v7 }
0x1629   :  { %2732 = vmatprep.subr.bf16.mxu1 %v2946_v4 }
0x162c   :  { %2734 = vmatpush3.bf16.msra.mxu1 %v3202_v2 }
0x162d   :  { %2741 = vmatprep.subr.bf16.mxu1 %v2946_v4 }
0x16fa   :  { %v1096_v17 = vpop.f32.mrb[10].mxu1 }
0x16fb   :  { %v3229_v18 = vadd.f32 %v2306_v16, %v1096_v17  ;;  %v2542_v20 = vpop.f32.mrb[11].mxu1 }
0x16fd   :  { %v1170_v21 = vadd.f32 %v1166_v12, %v3229_v18 }
0x16ff   :  { %2858 = vtanh.f32 %v1170_v21  ;;  %v2308_v23 = vmul.f32 -1.442695, %v1170_v21 }
0x1701   :  { %2860 = vpow2.f32 %v2308_v23 }
0x1709   :  { %v2859_v22 = vpop.eup %2858 }
0x170a   :  { %1180 = vrot.lane.b32.xlu0 %v2859_v22, %s2949_s13 }
0x170b   :  { %v2861_v24 = vpop.eup %2860 }
0x170c   :  { %v1174_v25 = vadd.f32 1.0, %v2861_v24 }
0x170e   :  { %2862 = vrcp.f32 %v1174_v25 }
0x1718   :  { %v2863_v26 = vpop.eup %2862 }
0x1719   :  { %v1178_v29 = vmul.f32 0.0, %v2863_v26 }
0x177c   :  { %v1181_v27 = vpop.permute.xlu0 %1180 }
0x177d   :  { %v1183_v28 = vmul.f32 %v2863_v26, %v1181_v27 }
0x177f   :  { %1185 = vrot.lane.b32.xlu1 %v1183_v28, %s2950_s14 }
0x17f1   :  { %v1186_v30 = vpop.permute.xlu1 %1185 }
0x17f2   :  { %v1188_v31 = vadd.f32 %v1186_v30, %v1178_v29 }
0x17f4   :  { %2864 = vtanh.f32 %v1188_v31  ;;  %v1282_v48 = vrot.slane %v1188_v31, 7 }
0x17fe   :  { %v2865_v32 = vpop.eup %2864 }
0x17ff   :  { %1191 = vrot.lane.b32.xlu0 %v2865_v32, %s2949_s13 }
0x1871   :  { %v1192_v33 = vpop.permute.xlu0 %1191 }
0x1872   :  { %v1194_v34 = vmul.f32 %v2863_v26, %v1192_v33 }
0x1874   :  { %1196 = vrot.lane.b32.xlu1 %v1194_v34, %s2950_s14 }
0x18e6   :  { %v1197_v36 = vpop.permute.xlu1 %1196 }
0x18e7   :  { %2563 = vmatmul.mubr.msk.f32.vlgmr.msra.gmra.mrb[12].mxu1 %vm52_vm1, %v1197_v36 }
0x18e8   :  { %2743 = vmatpush3.bf16.msra.mxu1 %v3186_v56  ;;  %2584 = vmatprep.mubr.msk.f32.mxu1 %vm2947_vm0, %v2948_v7 }
0x18e9   :  { %2744 = vmatprep.subr.bf16.mxu1 %v2946_v4 }
0x18ec   :  { %2746 = vmatpush3.bf16.msra.mxu1 %v3202_v2 }
0x18ed   :  { %2753 = vmatprep.subr.bf16.mxu1 %v2946_v4 }
0x19ba   :  { %v1266_v37 = vpop.f32.mrb[12].mxu1 }
0x19bb   :  { %v1271_v38 = vrot.slane %v1266_v37, 7  ;;  %v2564_v39 = vpop.f32.mrb[13].mxu1 }
0x19bd   :  { %v1273_v40 = vadd.f32 %v1271_v38, %v3229_v18 }
0x19bf   :  { %2866 = vtanh.f32 %v1273_v40  ;;  %v2310_v42 = vmul.f32 -1.442695, %v1273_v40 }
0x19c1   :  { %2868 = vpow2.f32 %v2310_v42 }
0x19c9   :  { %v2867_v41 = vpop.eup %2866 }
0x19ca   :  { %1286 = vrot.lane.b32.xlu0 %v2867_v41, %s2949_s13 }
0x19cb   :  { %v2869_v43 = vpop.eup %2868 }
0x19cc   :  { %v1277_v44 = vadd.f32 1.0, %v2869_v43 }
0x19ce   :  { %2870 = vrcp.f32 %v1277_v44 }
0x19d8   :  { %v2871_v45 = vpop.eup %2870 }
0x19d9   :  { %v1284_v49 = vmul.f32 %v2871_v45, %v1282_v48 }
0x1a3c   :  { %v1287_v46 = vpop.permute.xlu0 %1286 }
0x1a3d   :  { %v1289_v47 = vmul.f32 %v2871_v45, %v1287_v46 }
0x1a3f   :  { %1291 = vrot.lane.b32.xlu1 %v1289_v47, %s2950_s14 }
0x1ab1   :  { %v1292_v50 = vpop.permute.xlu1 %1291 }
0x1ab2   :  { %v1294_v19 = vadd.f32 %v1292_v50, %v1284_v49 }
0x1ab4   :  { %2872 = vtanh.f32 %v1294_v19  ;;  %v1389_v1 = vrot.slane %v1294_v19, 7 }
0x1abe   :  { %v2873_v51 = vpop.eup %2872 }
0x1abf   :  { %1297 = vrot.lane.b32.xlu0 %v2873_v51, %s2949_s13 }
0x1b31   :  { %v1298_v52 = vpop.permute.xlu0 %1297 }
0x1b32   :  { %v1300_v53 = vmul.f32 %v2871_v45, %v1298_v52 }
0x1b34   :  { %v1302_v55 = vrot.slane %v1300_v53, 1 }
0x1b36   :  { %1303 = vrot.lane.b32.xlu1 %v1302_v55, %s2950_s14 }
0x1ba8   :  { %v1304_v57 = vpop.permute.xlu1 %1303 }
0x1ba9   :  { %2574 = vmatmul.mubr.msk.f32.vlgmr.msra.gmra.mrb[10].mxu0 %vm52_vm1, %v1304_v57 }
0x1baa   :  { %2749 = vmatpush3.bf16.msra.mxu0 %v3186_v56  ;;  %2595 = vmatprep.mubr.msk.f32.mxu0 %vm2947_vm0, %v2948_v7 }
0x1bab   :  { %2750 = vmatprep.subr.bf16.mxu0 %v2946_v4 }
0x1bae   :  { %2752 = vmatpush3.bf16.msra.mxu0 %v3202_v2 }
0x1baf   :  { %2759 = vmatprep.subr.bf16.mxu0 %v2946_v4 }
0x1c7c   :  { %v1373_v58 = vpop.f32.mrb[10].mxu0 }
0x1c7d   :  { %v1378_v59 = vrot.slane %v1373_v58, 6  ;;  %v2575_v54 = vpop.f32.mrb[11].mxu0 }
0x1c7f   :  { %v1380_v35 = vadd.f32 %v1378_v59, %v3229_v18 }
0x1c81   :  { %2874 = vtanh.f32 %v1380_v35  ;;  %v2312_v61 = vmul.f32 -1.442695, %v1380_v35 }
0x1c83   :  { %2876 = vpow2.f32 %v2312_v61 }
0x1c8b   :  { %v2875_v60 = vpop.eup %2874 }
0x1c8c   :  { %1393 = vrot.lane.b32.xlu0 %v2875_v60, %s2949_s13 }
0x1c8d   :  { %v2877_v13 = vpop.eup %2876 }
0x1c8e   :  { %v1384_v62 = vadd.f32 1.0, %v2877_v13 }
0x1c90   :  { %2878 = vrcp.f32 %v1384_v62 }
0x1c9a   :  { %v2879_v63 = vpop.eup %2878 }
0x1c9b   :  { %v1391_v3 = vmul.f32 %v2879_v63, %v1389_v1 }
0x1cfe   :  { %v1394_v0 = vpop.permute.xlu0 %1393 }
0x1cff   :  { %v1396_v11 = vmul.f32 %v2879_v63, %v1394_v0 }
0x1d01   :  { %1398 = vrot.lane.b32.xlu1 %v1396_v11, %s2950_s14 }
0x1d73   :  { %v1399_v15 = vpop.permute.xlu1 %1398 }
0x1d74   :  { %v1401_v6 = vadd.f32 %v1399_v15, %v1391_v3 }
0x1d76   :  { %2880 = vtanh.f32 %v1401_v6  ;;  %v1496_v29 = vrot.slane %v1401_v6, 7 }
0x1d80   :  { %v2881_v8 = vpop.eup %2880 }
0x1d81   :  { %1404 = vrot.lane.b32.xlu0 %v2881_v8, %s2949_s13 }
0x1df3   :  { %v1405_v9 = vpop.permute.xlu0 %1404 }
0x1df4   :  { %v1407_v10 = vmul.f32 %v2879_v63, %v1405_v9 }
0x1df6   :  { %v1409_v12 = vrot.slane %v1407_v10, 2 }
0x1df8   :  { %1410 = vrot.lane.b32.xlu1 %v1409_v12, %s2950_s14 }
0x1e6a   :  { %v1411_v14 = vpop.permute.xlu1 %1410 }
0x1e6b   :  { %2585 = vmatmul.mubr.msk.f32.vlgmr.msra.gmra.mrb[14].mxu1 %vm52_vm1, %v1411_v14 }
0x1e6c   :  { %2755 = vmatpush3.bf16.msra.mxu1 %v3186_v56  ;;  %2606 = vmatprep.mubr.msk.f32.mxu1 %vm2947_vm0, %v2948_v7 }
0x1e6d   :  { %2756 = vmatprep.subr.bf16.mxu1 %v2946_v4 }
0x1e70   :  { %2758 = vmatpush3.bf16.msra.mxu1 %v3202_v2 }
0x1e71   :  { %2765 = vmatprep.subr.bf16.mxu1 %v2946_v4 }
0x1f3e   :  { %v1480_v16 = vpop.f32.mrb[14].mxu1 }
0x1f3f   :  { %v1485_v17 = vrot.slane %v1480_v16, 5  ;;  %v2586_v20 = vpop.f32.mrb[15].mxu1 }
0x1f41   :  { %v1487_v21 = vadd.f32 %v1485_v17, %v3229_v18 }
0x1f43   :  { %2882 = vtanh.f32 %v1487_v21  ;;  %v2314_v23 = vmul.f32 -1.442695, %v1487_v21 }
0x1f45   :  { %2884 = vpow2.f32 %v2314_v23 }
0x1f4d   :  { %v2883_v22 = vpop.eup %2882 }
0x1f4e   :  { %1500 = vrot.lane.b32.xlu0 %v2883_v22, %s2949_s13 }
0x1f4f   :  { %v2885_v24 = vpop.eup %2884 }
0x1f50   :  { %v1491_v25 = vadd.f32 1.0, %v2885_v24 }
0x1f52   :  { %2886 = vrcp.f32 %v1491_v25 }
0x1f5c   :  { %v2887_v26 = vpop.eup %2886 }
0x1f5d   :  { %v1498_v30 = vmul.f32 %v2887_v26, %v1496_v29 }
0x1fc0   :  { %v1501_v27 = vpop.permute.xlu0 %1500 }
0x1fc1   :  { %v1503_v28 = vmul.f32 %v2887_v26, %v1501_v27 }
0x1fc3   :  { %1505 = vrot.lane.b32.xlu1 %v1503_v28, %s2950_s14 }
0x2035   :  { %v1506_v31 = vpop.permute.xlu1 %1505 }
0x2036   :  { %v1508_v32 = vadd.f32 %v1506_v31, %v1498_v30 }
0x2038   :  { %2888 = vtanh.f32 %v1508_v32  ;;  %v1603_v50 = vrot.slane %v1508_v32, 7 }
0x2042   :  { %v2889_v33 = vpop.eup %2888 }
0x2043   :  { %1511 = vrot.lane.b32.xlu0 %v2889_v33, %s2949_s13 }
0x20b5   :  { %v1512_v34 = vpop.permute.xlu0 %1511 }
0x20b6   :  { %v1514_v36 = vmul.f32 %v2887_v26, %v1512_v34 }
0x20b8   :  { %v1516_v37 = vrot.slane %v1514_v36, 3 }
0x20ba   :  { %1517 = vrot.lane.b32.xlu1 %v1516_v37, %s2950_s14 }
0x212c   :  { %v1518_v38 = vpop.permute.xlu1 %1517 }
0x212d   :  { %2596 = vmatmul.mubr.msk.f32.vlgmr.msra.gmra.mrb[12].mxu0 %vm52_vm1, %v1518_v38 }
0x212e   :  { %2761 = vmatpush3.bf16.msra.mxu0 %v3186_v56  ;;  %2617 = vmatprep.mubr.msk.f32.mxu0 %vm2947_vm0, %v2948_v7 }
0x212f   :  { %2762 = vmatprep.subr.bf16.mxu0 %v2946_v4 }
0x2132   :  { %2764 = vmatpush3.bf16.msra.mxu0 %v3202_v2 }
0x2133   :  { %2771 = vmatprep.subr.bf16.mxu0 %v2946_v4 }
0x2200   :  { %v1587_v39 = vpop.f32.mrb[12].mxu0 }
0x2201   :  { %v1592_v40 = vrot.slane %v1587_v39, 4  ;;  %v2597_v41 = vpop.f32.mrb[13].mxu0 }
0x2203   :  { %v1594_v42 = vadd.f32 %v1592_v40, %v3229_v18 }
0x2205   :  { %2890 = vtanh.f32 %v1594_v42  ;;  %v2316_v44 = vmul.f32 -1.442695, %v1594_v42 }
0x2207   :  { %2892 = vpow2.f32 %v2316_v44  ;;  %v1945_v44 = vld [vmem:[%s3377_s5 + $0x8] sm:$0xff] }
0x220f   :  { %v2891_v43 = vpop.eup %2890 }
0x2210   :  { %1607 = vrot.lane.b32.xlu0 %v2891_v43, %s2949_s13  ;;  %v1944_v43 = vld [vmem:[%s3377_s5] sm:$0xff] }
0x2211   :  { %v2893_v45 = vpop.eup %2892 }
0x2212   :  { %v1598_v46 = vadd.f32 1.0, %v2893_v45  ;;  %v2772_v45 = vpack.c.bf16 %v1945_v44, %v1944_v43 }
0x2214   :  { %2894 = vrcp.f32 %v1598_v46 }
0x221e   :  { %v2895_v47 = vpop.eup %2894 }
0x221f   :  { %v1605_v19 = vmul.f32 %v2895_v47, %v1603_v50  ;;  %v1947_v50 = vld [vmem:[%s3377_s5 + $0x18] sm:$0xff] }
0x2282   :  { %v1608_v48 = vpop.permute.xlu0 %1607 }
0x2283   :  { %v1610_v49 = vmul.f32 %v2895_v47, %v1608_v48 }
0x2285   :  { %1612 = vrot.lane.b32.xlu1 %v1610_v49, %s2950_s14  ;;  %v1946_v49 = vld [vmem:[%s3377_s5 + $0x10] sm:$0xff] }
0x22f7   :  { %v1613_v51 = vpop.permute.xlu1 %1612 }
0x22f8   :  { %v1615_v52 = vadd.f32 %v1613_v51, %v1605_v19  ;;  %v2775_v19 = vpack.c.bf16 %v1947_v50, %v1946_v49 }
0x22fa   :  { %2896 = vtanh.f32 %v1615_v52 }
0x2304   :  { %v2897_v53 = vpop.eup %2896 }
0x2305   :  { %1618 = vrot.lane.b32.xlu0 %v2897_v53, %s2949_s13 }
0x2377   :  { %v1619_v55 = vpop.permute.xlu0 %1618 }
0x2378   :  { %v1621_v57 = vmul.f32 %v2895_v47, %v1619_v55  ;;  %v1948_v55 = vrot.slane %v3212_v5, 7  ;;  %v2026_v5 = vld [vmem:[%s3377_s5 + $0x30] sm:$0xff] }
0x237a   :  { %v1623_v58 = vrot.slane %v1621_v57, 4 }
0x237c   :  { %1624 = vrot.lane.b32.xlu1 %v1623_v58, %s2950_s14 }
0x23ee   :  { %v1625_v59 = vpop.permute.xlu1 %1624 }
0x23ef   :  { %2607 = vmatmul.mubr.msk.f32.vlgmr.msra.gmra.mrb[16].mxu1 %vm52_vm1, %v1625_v59 }
0x23f0   :  { %2767 = vmatpush3.bf16.msra.mxu1 %v3186_v56  ;;  %2628 = vmatprep.mubr.msk.f32.mxu1 %vm2947_vm0, %v2948_v7 }
0x23f1   :  { %2768 = vmatprep.subr.bf16.mxu1 %v2946_v4 }
0x23f4   :  { %2770 = vmatpush3.bf16.msra.mxu1 %v3202_v2  ;;  %v1710_v2 = vrot.slane %v1615_v52, 7 }
0x23f5   :  { %2658 = vmatprep.subr.mxu1 %v2948_v7 }
0x24c2   :  { %v1694_v54 = vpop.f32.mrb[16].mxu1 }
0x24c3   :  { %v1699_v35 = vrot.slane %v1694_v54, 3  ;;  %v2608_v60 = vpop.f32.mrb[17].mxu1 }
0x24c4   :  { %v2024_v60 = vld [vmem:[%s3377_s5 + $0x20] sm:$0xff] }
0x24c5   :  { %v1701_v61 = vadd.f32 %v1699_v35, %v3229_v18 }
0x24c7   :  { %2898 = vtanh.f32 %v1701_v61  ;;  %v2318_v62 = vmul.f32 -1.442695, %v1701_v61  ;;  %v2025_v61 = vld [vmem:[%s3377_s5 + $0x28] sm:$0xff] }
0x24c9   :  { %2900 = vpow2.f32 %v2318_v62  ;;  %v2027_v62 = vld [vmem:[%s3377_s5 + $0x38] sm:$0xff] }
0x24d1   :  { %v2899_v13 = vpop.eup %2898 }
0x24d2   :  { %1714 = vrot.lane.b32.xlu0 %v2899_v13, %s2949_s13  ;;  %v2778_v13 = vpack.c.bf16 %v2025_v61, %v2024_v60 }
0x24d3   :  { %v2901_v56 = vpop.eup %2900 }
0x24d4   :  { %v1705_v63 = vadd.f32 1.0, %v2901_v56  ;;  %v2781_v56 = vpack.c.bf16 %v2027_v62, %v2026_v5 }
0x24d6   :  { %2902 = vrcp.f32 %v1705_v63 }
0x24e0   :  { %v2903_v0 = vpop.eup %2902 }
0x24e1   :  { %v1712_v3 = vmul.f32 %v2903_v0, %v1710_v2  ;;  %v2106_v2 = vld [vmem:[%s3378_s6] sm:$0xf] }
0x2544   :  { %v1715_v11 = vpop.permute.xlu0 %1714 }
0x2545   :  { %v1717_v1 = vmul.f32 %v2903_v0, %v1715_v11 }
0x2547   :  { %1719 = vrot.lane.b32.xlu1 %v1717_v1, %s2950_s14 }
0x25b9   :  { %v1720_v15 = vpop.permute.xlu1 %1719 }
0x25ba   :  { %v1722_v6 = vadd.f32 %v1720_v15, %v1712_v3  ;;  %v2187_v15 = vld [vmem:[%s3380_s8] sm:$0xf]  ;;  %s2926_s8 = scalar_lea.vmem %s2274_s1, 32 }
0x25bc   :  { %2904 = vtanh.f32 %v1722_v6  ;;  %v1817_v29 = vrot.slane %v1722_v6, 7  ;;  %v1943_v6 = vld [vmem:[%s3379_s7] sm:$0x1] }
0x25c6   :  { %v2905_v8 = vpop.eup %2904 }
0x25c7   :  { %1725 = vrot.lane.b32.xlu0 %v2905_v8, %s2949_s13 }
0x2639   :  { %v1726_v9 = vpop.permute.xlu0 %1725 }
0x263a   :  { %v1728_v10 = vmul.f32 %v2903_v0, %v1726_v9 }
0x263c   :  { %v1730_v12 = vrot.slane %v1728_v10, 5 }
0x263e   :  { %1731 = vrot.lane.b32.xlu1 %v1730_v12, %s2950_s14 }
0x26b0   :  { %v1732_v14 = vpop.permute.xlu1 %1731 }
0x26b1   :  { %2618 = vmatmul.mubr.msk.f32.vlgmr.msra.gmra.mrb[14].mxu0 %vm52_vm1, %v1732_v14 }
0x26b2   :  { %2639 = vmatprep.mubr.msk.f32.mxu0 %vm2947_vm0, %v2948_v7  ;;  %2773 = vmatpush3.bf16.msra.mxu0 %v2772_v45 }
0x26b3   :  { %2774 = vmatprep.subr.bf16.mxu0 %v2946_v4 }
0x26b6   :  { %2776 = vmatpush3.bf16.msra.mxu0 %v2775_v19 }
0x26b7   :  { %2777 = vmatprep.subr.bf16.mxu0 %v2946_v4 }
0x2784   :  { %v1801_v16 = vpop.f32.mrb[14].mxu0 }
0x2785   :  { %v1806_v17 = vrot.slane %v1801_v16, 2  ;;  %v2619_v20 = vpop.f32.mrb[15].mxu0 }
0x2787   :  { %v1808_v21 = vadd.f32 %v1806_v17, %v3229_v18 }
0x2789   :  { %2906 = vtanh.f32 %v1808_v21  ;;  %v2320_v23 = vmul.f32 -1.442695, %v1808_v21 }
0x278b   :  { %2908 = vpow2.f32 %v2320_v23 }
0x2793   :  { %v2907_v22 = vpop.eup %2906 }
0x2794   :  { %1821 = vrot.lane.b32.xlu0 %v2907_v22, %s2949_s13 }
0x2795   :  { %v2909_v24 = vpop.eup %2908 }
0x2796   :  { %v1812_v25 = vadd.f32 1.0, %v2909_v24 }
0x2798   :  { %2910 = vrcp.f32 %v1812_v25 }
0x27a2   :  { %v2911_v26 = vpop.eup %2910 }
0x27a3   :  { %v1819_v30 = vmul.f32 %v2911_v26, %v1817_v29 }
0x2806   :  { %v1822_v27 = vpop.permute.xlu0 %1821 }
0x2807   :  { %v1824_v28 = vmul.f32 %v2911_v26, %v1822_v27 }
0x2809   :  { %1826 = vrot.lane.b32.xlu1 %v1824_v28, %s2950_s14 }
0x287b   :  { %v1827_v31 = vpop.permute.xlu1 %1826 }
0x287c   :  { %v1829_v32 = vadd.f32 %v1827_v31, %v1819_v30 }
0x287e   :  { %2912 = vtanh.f32 %v1829_v32  ;;  %v1924_v57 = vrot.slane %v1829_v32, 7 }
0x2888   :  { %v2913_v33 = vpop.eup %2912 }
0x2889   :  { %1832 = vrot.lane.b32.xlu0 %v2913_v33, %s2949_s13 }
0x28fb   :  { %v1833_v34 = vpop.permute.xlu0 %1832 }
0x28fc   :  { %v1835_v36 = vmul.f32 %v2911_v26, %v1833_v34 }
0x28fe   :  { %v1837_v37 = vrot.slane %v1835_v36, 6 }
0x2900   :  { %1838 = vrot.lane.b32.xlu1 %v1837_v37, %s2950_s14 }
0x2972   :  { %v1839_v38 = vpop.permute.xlu1 %1838 }
0x2973   :  { %2629 = vmatmul.mubr.msk.f32.vlgmr.msra.gmra.mrb[18].mxu1 %vm52_vm1, %v1839_v38 }
0x2974   :  { %2660 = vmatprep.mubr.msk.f32.mxu1 %vm2947_vm0, %v2948_v7  ;;  %2659 = vmatpush3.msk.msra.mxu1 %vm2111_vm10, %v2187_v15 }
0x2a46   :  { %v1908_v39 = vpop.f32.mrb[18].mxu1 }
0x2a47   :  { %v1913_v40 = vrot.slane %v1908_v39, 1  ;;  %v2630_v41 = vpop.f32.mrb[19].mxu1 }
0x2a49   :  { %v1915_v42 = vadd.f32 %v1913_v40, %v3229_v18 }
0x2a4b   :  { %2914 = vtanh.f32 %v1915_v42  ;;  %v2322_v47 = vmul.f32 -1.442695, %v1915_v42 }
0x2a4d   :  { %2916 = vpow2.f32 %v2322_v47 }
0x2a55   :  { %v2915_v46 = vpop.eup %2914 }
0x2a56   :  { %1928 = vrot.lane.b32.xlu0 %v2915_v46, %s2949_s13 }
0x2a57   :  { %v2917_v48 = vpop.eup %2916 }
0x2a58   :  { %v1919_v18 = vadd.f32 1.0, %v2917_v48 }
0x2a5a   :  { %2918 = vrcp.f32 %v1919_v18 }
0x2a64   :  { %v2919_v51 = vpop.eup %2918 }
0x2a65   :  { %v1926_v58 = vmul.f32 %v2919_v51, %v1924_v57 }
0x2ac8   :  { %v1929_v52 = vpop.permute.xlu0 %1928 }
0x2ac9   :  { %v1931_v53 = vmul.f32 %v2919_v51, %v1929_v52 }
0x2acb   :  { %1933 = vrot.lane.b32.xlu1 %v1931_v53, %s2950_s14 }
0x2acf   :  { %1949 = vrot.lane.b32.xlu1 %v1948_v55, %s2950_s14 }
0x2b3d   :  { %v1934_v59 = vpop.permute.xlu1 %1933 }
0x2b3e   :  { %v1936_v54 = vadd.f32 %v1934_v59, %v1926_v58 }
0x2b40   :  { %2920 = vtanh.f32 %v1936_v54 }
0x2b41   :  { %v1950_v35 = vpop.permute.xlu1 %1949 }
0x2b42   :  { %2640 = vmatmul.mubr.msk.f32.vlgmr.msra.gmra.mrb[16].mxu0 %vm52_vm1, %v1950_v35 }
0x2b43   :  { %2650 = vmatprep.mubr.msk.f32.mxu0 %vm2947_vm0, %v2948_v7  ;;  %2779 = vmatpush3.bf16.msra.mxu0 %v2778_v13 }
0x2b44   :  { %2780 = vmatprep.subr.bf16.mxu0 %v2946_v4  ;;  %v2105_v4 = vld [vmem:[%s3376_s4] sm:$0x1]  ;;  %s2922_s4 = scalar_lea.vmem %s2274_s1, 16 }
0x2b45   :  { %p2923_p0 = scmp.ne.s32.totalorder %s2274_s1, %s2922_s4  ;;  %p2928_p2 = scmp.lt.s32.totalorder %s2926_s8, %s2922_s4 }
0x2b47   :  { %2782 = vmatpush3.bf16.msra.mxu0 %v2781_v56  ;;  %p2929_p3 = por %p2928_p2, %p2927_p1 }
0x2b48   :  { %2653 = vmatprep.subr.mxu0 %v2948_v7 }
0x2b49   :  { %p2930_p4 = pnand %p2929_p3, %p2923_p0 }
0x2b4a   :  { %v2921_v63 = vpop.eup %2920 }
0x2b4b   :  { %1939 = vrot.lane.b32.xlu0 %v2921_v63, %s2949_s13 }
0x2bbd   :  { %v1940_v0 = vpop.permute.xlu0 %1939 }
0x2bbe   :  { %v1942_v11 = vmul.f32 %v2919_v51, %v1940_v0 }
0x2bc0   :  { %v2029_v1 = vrot.slane %v1942_v11, 7 }
0x2bc2   :  { %2030 = vrot.lane.b32.xlu0 %v2029_v1, %s2950_s14 }
0x2c34   :  { %v2031_v3 = vpop.permute.xlu0 %2030 }
0x2c35   :  { %2651 = vmatmul.mubr.msk.f32.vlgmr.msra.gmra.mrb[16].mxu0 %vm52_vm1, %v2031_v3 }
0x2c36   :  { %2654 = vmatpush3.msk.msra.mxu0 %vm2111_vm10, %v2106_v2  ;;  %2655 = vmatprep.mubr.msk.f32.mxu0 %vm2947_vm0, %v2948_v7  ;;  %v2188_v7 = vld [vmem:[#allocation3] sm:$0x1] }
0x2c3d   :  { %2656 = vmatmul.mubr.msk.f32.vlgmr.msra.gmra.mrb[16].mxu0 %vm2107_vm11, %v2105_v4 }
0x2d10   :  { %v2181_v8 = vpop.f32.mrb[16].mxu0 }
0x2d11   :  { %v2783_v9 = vadd.f32 %v2181_v8, %v1943_v6  ;;  %v2657_v10 = vpop.f32.mrb[17].mxu0 }
0x2d13   :  { %v2186_v12 = vmax.f32 %v2783_v9, 0.0 }
0x2d15   :  { %2661 = vmatmul.mubr.msk.f32.vlgmr.msra.gmra.mrb[20].mxu1 %vm2107_vm11, %v2186_v12 }
0x2de8   :  { %v2261_v14 = vpop.f32.mrb[20].mxu1 }
0x2de9   :  { %v2262_v16 = vadd.f32 %v2261_v14, %v2188_v7  ;;  %v2662_v17 = vpop.f32.mrb[21].mxu1 }
0x2deb   :  { %2266 = vst.msk [vmem:[#allocation4] sm:$0x1] %vm2265_vm12, %v2262_v16 }
0x2dec   :  { %2933 = shalt.err (!%p2930_p4)
}
0x2ded   :  { %s2934_s3 = scalar_lea.hbm %s3382_s10, 16 }
0x2dee   :  { %p2935_p5 = scmp.ne.s32.totalorder %s3382_s10, %s2934_s3  ;;  %p2938_p6 = scmp.lt.u32.totalorder %s2934_s3, %s3382_s10 }
0x2df0   :  { %p2940_p7 = pnand %p2938_p6, %p2935_p5 }
0x2df2   :  { %2943 = shalt.err (!%p2940_p7)
}
0x2df3   :  { %2276 = dma.vmem_to_hbm [thread:$0]  %s2274_s1, 16, %s3382_s10, [#allocation5]  }
0x2df4   :  { %2944 = dma.done.wait [#allocation5], 16  }
0x2df5   :  { %2945 = vsyncadd [#allocation5], 4294967280 }
0x2df6   :  { %2280 = vsyncpa [#allocation5], 1 }

</bundles_post_ra>
